<compile_context>
chip_gen: v5e
topology: v5e:2x2
jax: 0.10.0
libtpu: 0.0.40
codegen_flags: <defaults>
</compile_context>

<pallas_src>
import jax
import jax.numpy as jnp
from jax import lax
from jax.experimental import pallas as pl
from jax.experimental.pallas import tpu as pltpu

D_MODEL = 32
N_HEADS = 4
D_HEAD = D_MODEL // N_HEADS
D_FF = 64
N_LAYERS = 2
EPS = 1e-6
NEG_INF = -1e9

_VMEM = pltpu.MemorySpace.VMEM


# ------------------------------ Fused encoder kernel ------------------------------
def _encoder_kernel(x_ref, bias_ref,
                    ln1a_ref, ln1b_ref, wqkv_ref, bqkv_ref, wo_ref, bo_ref,
                    ln2a_ref, ln2b_ref, w1_ref, b1_ref, w2_ref, b2_ref,
                    norma_ref, normb_ref, o_ref):
    x = x_ref[...].astype(jnp.float32)      # (B*S, D) residual stream, stays resident
    bias = bias_ref[...]                    # (B*S, B*S) additive block-diag mask bias
    n_tok, d = x.shape
    scale = 1.0 / float(D_HEAD) ** 0.5

    def layer_norm(t, gamma, beta):
        # torch.Tensor.std is unbiased (ddof=1); eps is added to std (not var).
        mean = jnp.mean(t, axis=-1, keepdims=True)
        var = jnp.sum((t - mean) ** 2, axis=-1, keepdims=True) * (1.0 / (d - 1))
        inv = pl.reciprocal(jnp.sqrt(var) + EPS, approx=True)
        return gamma * (t - mean) * inv + beta

    for l in range(N_LAYERS):
        # ---- sublayer 0: x + self_attn(LayerNorm(x), mask) ----
        y = layer_norm(x, ln1a_ref[l], ln1b_ref[l])
        qkv = (jnp.dot(y, wqkv_ref[l], preferred_element_type=jnp.float32)
               + bqkv_ref[l])                                          # (B*S, 3D)
        proj = jnp.zeros((n_tok, d), jnp.float32)
        for h in range(N_HEADS):
            lo = h * D_HEAD
            qh = qkv[:, lo:lo + D_HEAD]                                # (B*S, Dk)
            kh = qkv[:, d + lo:d + lo + D_HEAD]
            vh = qkv[:, 2 * d + lo:2 * d + lo + D_HEAD]
            sc = (jnp.dot(qh, kh.T, preferred_element_type=jnp.float32) * scale
                  + bias)                                              # (B*S, B*S)
            sc = sc - jnp.max(sc, axis=-1, keepdims=True)
            p = jnp.exp(sc)
            p = p * pl.reciprocal(jnp.sum(p, axis=-1, keepdims=True), approx=True)
            oh = jnp.dot(p, vh, preferred_element_type=jnp.float32)    # (B*S, Dk)
            # concat over heads followed by @Wo  ==  sum_h (oh @ Wo[h])
            proj = proj + jnp.dot(oh, wo_ref[l, h],
                                  preferred_element_type=jnp.float32)
        x = x + proj + bo_ref[l]

        # ---- sublayer 1: x + FFN(LayerNorm(x)) ----
        y = layer_norm(x, ln2a_ref[l], ln2b_ref[l])
        hid = jnp.maximum(
            jnp.dot(y, w1_ref[l], preferred_element_type=jnp.float32) + b1_ref[l], 0.0)
        x = x + jnp.dot(hid, w2_ref[l], preferred_element_type=jnp.float32) + b2_ref[l]

    # Final LayerNorm (the Encoder module's own norm)
    o_ref[...] = layer_norm(x, norma_ref[...], normb_ref[...]).astype(o_ref.dtype)


# ------------------------------ Parameter setup ------------------------------
def init_params(key):
    def dense(k, fan_in, fan_out):
        return jax.random.normal(k, (fan_in, fan_out), jnp.float32) / jnp.sqrt(
            jnp.float32(fan_in))

    keys = jax.random.split(key, N_LAYERS * 6)
    wqkv, wo, w1, w2 = [], [], [], []
    ki = 0
    for _ in range(N_LAYERS):
        wq = dense(keys[ki], D_MODEL, D_MODEL); ki += 1
        wk = dense(keys[ki], D_MODEL, D_MODEL); ki += 1
        wv = dense(keys[ki], D_MODEL, D_MODEL); ki += 1
        wqkv.append(jnp.concatenate([wq, wk, wv], axis=1))   # fused (D, 3D) projection
        wo_full = dense(keys[ki], D_MODEL, D_MODEL); ki += 1
        wo.append(wo_full.reshape(N_HEADS, D_HEAD, D_MODEL)) # pre-split per head
        w1.append(dense(keys[ki], D_MODEL, D_FF)); ki += 1
        w2.append(dense(keys[ki], D_FF, D_MODEL)); ki += 1

    ones = jnp.ones((N_LAYERS, 1, D_MODEL), jnp.float32)
    zeros = jnp.zeros((N_LAYERS, 1, D_MODEL), jnp.float32)
    return dict(
        ln1_a=ones, ln1_b=zeros, ln2_a=ones, ln2_b=zeros,
        wqkv=jnp.stack(wqkv),
        bqkv=jnp.zeros((N_LAYERS, 1, 3 * D_MODEL), jnp.float32),
        wo=jnp.stack(wo), bo=zeros,
        w1=jnp.stack(w1), b1=jnp.zeros((N_LAYERS, 1, D_FF), jnp.float32),
        w2=jnp.stack(w2), b2=zeros,
        norm_a=jnp.ones((1, D_MODEL), jnp.float32),
        norm_b=jnp.zeros((1, D_MODEL), jnp.float32))


# -------------------------------- Encoder.forward ----------------------------
def encoder_forward(params, x, mask):
    B, S, D = x.shape
    x2 = x.reshape(B * S, D)
    # Per-batch additive mask (0 = attend, -1e9 = masked), embedded into a
    # block-diagonal (B*S, B*S) bias so the kernel only does flat 2-D attention.
    mbias = jnp.where(mask == 0, jnp.float32(NEG_INF), jnp.float32(0.0))   # (B, S, S)
    rows = []
    for b in range(B):
        row = [mbias[b] if bb == b else jnp.full((S, S), jnp.float32(NEG_INF))
               for bb in range(B)]
        rows.append(jnp.concatenate(row, axis=1))
    full_bias = jnp.concatenate(rows, axis=0)                              # (B*S, B*S)

    vmem = pl.BlockSpec(memory_space=_VMEM)
    out = pl.pallas_call(
        _encoder_kernel,
        out_shape=jax.ShapeDtypeStruct((B * S, D), x.dtype),
        in_specs=[vmem] * 16,
        out_specs=vmem,
    )(x2, full_bias,
      params["ln1_a"], params["ln1_b"], params["wqkv"], params["bqkv"],
      params["wo"], params["bo"], params["ln2_a"], params["ln2_b"],
      params["w1"], params["b1"], params["w2"], params["b2"],
      params["norm_a"], params["norm_b"])
    return out.reshape(B, S, D)


encoder_forward_jit = jax.jit(encoder_forward)


# ---------------------- Pure-JAX reference (PyTorch semantics) ----------------------
def _reference_encoder(params, x, mask):
    B, S, D = x.shape

    def ln(t, g, b):
        mean = t.mean(-1, keepdims=True)
        var = ((t - mean) ** 2).sum(-1, keepdims=True) / (D - 1)   # unbiased std
        return g * (t - mean) / (jnp.sqrt(var) + EPS) + b

    h = x
    for l in range(N_LAYERS):
        y = ln(h, params["ln1_a"][l, 0], params["ln1_b"][l, 0]).reshape(B * S, D)
        qkv = y @ params["wqkv"][l] + params["bqkv"][l]
        q, k, v = jnp.split(qkv, 3, axis=-1)

        def heads(t):
            return t.reshape(B, S, N_HEADS, D_HEAD).transpose(0, 2, 1, 3)

        q, k, v = heads(q), heads(k), heads(v)
        sc = jnp.einsum('bhqd,bhkd->bhqk', q, k) / jnp.sqrt(jnp.float32(D_HEAD))
        sc = jnp.where(mask[:, None, :, :] == 0, jnp.float32(NEG_INF), sc)
        p = jax.nn.softmax(sc, axis=-1)
        o = jnp.einsum('bhqk,bhkd->bhqd', p, v).transpose(0, 2, 1, 3).reshape(B * S, D)
        wo_flat = params["wo"][l].reshape(D, D)
        h = h + (o @ wo_flat + params["bo"][l]).reshape(B, S, D)

        y = ln(h, params["ln2_a"][l, 0], params["ln2_b"][l, 0]).reshape(B * S, D)
        hid = jnp.maximum(y @ params["w1"][l] + params["b1"][l], 0.0)
        h = h + (hid @ params["w2"][l] + params["b2"][l]).reshape(B, S, D)
    return ln(h, params["norm_a"][0], params["norm_b"][0])


if __name__ == "__main__":
    key = jax.random.PRNGKey(0)
    kx, kp = jax.random.split(key)
    B, S = 2, 8
    x = jax.random.normal(kx, (B, S, D_MODEL), jnp.float32)
    # mask: 1 = attend, 0 = masked; mask out the last 2 key positions of batch 1.
    mask = jnp.ones((B, S, S), jnp.float32)
    mask = mask.at[1, :, S - 2:].set(0.0)

    params = init_params(kp)
    out = jax.block_until_ready(encoder_forward_jit(params, x, mask))
    ref = _reference_encoder(params, x, mask)

    assert out.shape == (B, S, D_MODEL)
    assert bool(jnp.all(jnp.isfinite(out)))
    assert bool(jnp.allclose(out, ref, atol=2e-2, rtol=2e-2))
    print("KERNEL_OK")
</pallas_src>

<mosaic_0001>
module attributes {stable_mosaic.version = 11 : i64} {
  func.func @_encoder_kernel(%arg0: memref<16x32xf32, #tpu.memory_space<vmem>>, %arg1: memref<16x16xf32, #tpu.memory_space<vmem>>, %arg2: memref<2x1x32xf32, #tpu.memory_space<vmem>>, %arg3: memref<2x1x32xf32, #tpu.memory_space<vmem>>, %arg4: memref<2x32x96xf32, #tpu.memory_space<vmem>>, %arg5: memref<2x1x96xf32, #tpu.memory_space<vmem>>, %arg6: memref<2x4x8x32xf32, #tpu.memory_space<vmem>>, %arg7: memref<2x1x32xf32, #tpu.memory_space<vmem>>, %arg8: memref<2x1x32xf32, #tpu.memory_space<vmem>>, %arg9: memref<2x1x32xf32, #tpu.memory_space<vmem>>, %arg10: memref<2x32x64xf32, #tpu.memory_space<vmem>>, %arg11: memref<2x1x64xf32, #tpu.memory_space<vmem>>, %arg12: memref<2x64x32xf32, #tpu.memory_space<vmem>>, %arg13: memref<2x1x32xf32, #tpu.memory_space<vmem>>, %arg14: memref<1x32xf32, #tpu.memory_space<vmem>>, %arg15: memref<1x32xf32, #tpu.memory_space<vmem>>, %arg16: memref<16x32xf32, #tpu.memory_space<vmem>>) attributes {dimension_semantics = [], scalar_prefetch = 0 : i64, scratch_operands = 0 : i64, tpu.core_type = #tpu.core_type<tc>} {
    %c0 = arith.constant 0 : index
    %c0_0 = arith.constant 0 : index
    %0 = vector.load %arg0[%c0, %c0_0] : memref<16x32xf32, #tpu.memory_space<vmem>>, vector<16x32xf32>
    %c0_1 = arith.constant 0 : index
    %c0_2 = arith.constant 0 : index
    %1 = vector.load %arg1[%c0_1, %c0_2] : memref<16x16xf32, #tpu.memory_space<vmem>>, vector<16x16xf32>
    %c0_3 = arith.constant 0 : index
    %c0_4 = arith.constant 0 : index
    %c0_5 = arith.constant 0 : index
    %2 = vector.load %arg2[%c0_3, %c0_4, %c0_5] : memref<2x1x32xf32, #tpu.memory_space<vmem>>, vector<1x1x32xf32>
    %3 = vector.shape_cast %2 : vector<1x1x32xf32> to vector<1x32xf32>
    %c0_6 = arith.constant 0 : index
    %c0_7 = arith.constant 0 : index
    %c0_8 = arith.constant 0 : index
    %4 = vector.load %arg3[%c0_6, %c0_7, %c0_8] : memref<2x1x32xf32, #tpu.memory_space<vmem>>, vector<1x1x32xf32>
    %5 = vector.shape_cast %4 : vector<1x1x32xf32> to vector<1x32xf32>
    %cst = arith.constant dense<0.000000e+00> : vector<16xf32>
    %6 = vector.multi_reduction <add>, %0, %cst [1] : vector<16x32xf32> to vector<16xf32>
    %7 = vector.shape_cast %6 : vector<16xf32> to vector<16x1xf32>
    %cst_9 = arith.constant 3.200000e+01 : f32
    %8 = vector.broadcast %cst_9 : f32 to vector<16x1xf32>
    %9 = arith.divf %7, %8 : vector<16x1xf32>
    %10 = vector.broadcast %9 : vector<16x1xf32> to vector<16x32xf32>
    %11 = arith.subf %0, %10 : vector<16x32xf32>
    %12 = arith.mulf %11, %11 : vector<16x32xf32>
    %cst_10 = arith.constant dense<0.000000e+00> : vector<16xf32>
    %13 = vector.multi_reduction <add>, %12, %cst_10 [1] : vector<16x32xf32> to vector<16xf32>
    %14 = vector.shape_cast %13 : vector<16xf32> to vector<16x1xf32>
    %cst_11 = arith.constant 0.0322580636 : f32
    %15 = vector.broadcast %cst_11 : f32 to vector<16x1xf32>
    %16 = arith.mulf %14, %15 : vector<16x1xf32>
    %17 = math.sqrt %16 : vector<16x1xf32>
    %cst_12 = arith.constant 9.99999997E-7 : f32
    %18 = vector.broadcast %cst_12 : f32 to vector<16x1xf32>
    %19 = arith.addf %17, %18 : vector<16x1xf32>
    %20 = tpu.reciprocal %19 {approx = true} : vector<16x1xf32> -> vector<16x1xf32>
    %21 = vector.broadcast %9 : vector<16x1xf32> to vector<16x32xf32>
    %22 = arith.subf %0, %21 : vector<16x32xf32>
    %23 = vector.broadcast %3 : vector<1x32xf32> to vector<16x32xf32>
    %24 = arith.mulf %23, %22 : vector<16x32xf32>
    %25 = vector.broadcast %20 : vector<16x1xf32> to vector<16x32xf32>
    %26 = arith.mulf %24, %25 : vector<16x32xf32>
    %27 = vector.broadcast %5 : vector<1x32xf32> to vector<16x32xf32>
    %28 = arith.addf %26, %27 : vector<16x32xf32>
    %c0_13 = arith.constant 0 : index
    %c0_14 = arith.constant 0 : index
    %c0_15 = arith.constant 0 : index
    %29 = vector.load %arg4[%c0_13, %c0_14, %c0_15] : memref<2x32x96xf32, #tpu.memory_space<vmem>>, vector<1x32x96xf32>
    %30 = vector.shape_cast %29 : vector<1x32x96xf32> to vector<32x96xf32>
    %cst_16 = arith.constant dense<0.000000e+00> : vector<16x96xf32>
    %31 = tpu.matmul %28, %30, %cst_16 {dimension_numbers = #tpu.dot_dimension_numbers<[1], [0], [0], [1], [0, 0, 1, 1], [], []>} : vector<16x32xf32>, vector<32x96xf32>, vector<16x96xf32> -> vector<16x96xf32>
    %c0_17 = arith.constant 0 : index
    %c0_18 = arith.constant 0 : index
    %c0_19 = arith.constant 0 : index
    %32 = vector.load %arg5[%c0_17, %c0_18, %c0_19] : memref<2x1x96xf32, #tpu.memory_space<vmem>>, vector<1x1x96xf32>
    %33 = vector.shape_cast %32 : vector<1x1x96xf32> to vector<1x96xf32>
    %34 = vector.broadcast %33 : vector<1x96xf32> to vector<16x96xf32>
    %35 = arith.addf %31, %34 : vector<16x96xf32>
    %cst_20 = arith.constant 0.000000e+00 : f32
    %36 = vector.broadcast %cst_20 : f32 to vector<16x32xf32>
    %37 = vector.extract_strided_slice %35 {offsets = [0, 0], sizes = [16, 8], strides = [1, 1]} : vector<16x96xf32> to vector<16x8xf32>
    %38 = vector.extract_strided_slice %35 {offsets = [0, 32], sizes = [16, 8], strides = [1, 1]} : vector<16x96xf32> to vector<16x8xf32>
    %39 = vector.extract_strided_slice %35 {offsets = [0, 64], sizes = [16, 8], strides = [1, 1]} : vector<16x96xf32> to vector<16x8xf32>
    %40 = tpu.transpose %38, [1, 0] : vector<16x8xf32> -> vector<8x16xf32>
    %cst_21 = arith.constant dense<0.000000e+00> : vector<16x16xf32>
    %41 = tpu.matmul %37, %40, %cst_21 {dimension_numbers = #tpu.dot_dimension_numbers<[1], [0], [0], [1], [0, 0, 1, 1], [], []>} : vector<16x8xf32>, vector<8x16xf32>, vector<16x16xf32> -> vector<16x16xf32>
    %cst_22 = arith.constant 0.353553385 : f32
    %42 = vector.broadcast %cst_22 : f32 to vector<16x16xf32>
    %43 = arith.mulf %41, %42 : vector<16x16xf32>
    %44 = arith.addf %43, %1 : vector<16x16xf32>
    %cst_23 = arith.constant dense<0xFF800000> : vector<16xf32>
    %45 = vector.multi_reduction <maximumf>, %44, %cst_23 [1] : vector<16x16xf32> to vector<16xf32>
    %46 = vector.shape_cast %45 : vector<16xf32> to vector<16x1xf32>
    %47 = vector.broadcast %46 : vector<16x1xf32> to vector<16x16xf32>
    %48 = arith.subf %44, %47 : vector<16x16xf32>
    %49 = math.exp %48 : vector<16x16xf32>
    %cst_24 = arith.constant dense<0.000000e+00> : vector<16xf32>
    %50 = vector.multi_reduction <add>, %49, %cst_24 [1] : vector<16x16xf32> to vector<16xf32>
    %51 = vector.shape_cast %50 : vector<16xf32> to vector<16x1xf32>
    %52 = tpu.reciprocal %51 {approx = true} : vector<16x1xf32> -> vector<16x1xf32>
    %53 = vector.broadcast %52 : vector<16x1xf32> to vector<16x16xf32>
    %54 = arith.mulf %49, %53 : vector<16x16xf32>
    %cst_25 = arith.constant dense<0.000000e+00> : vector<16x8xf32>
    %55 = tpu.matmul %54, %39, %cst_25 {dimension_numbers = #tpu.dot_dimension_numbers<[1], [0], [0], [1], [0, 0, 1, 1], [], []>} : vector<16x16xf32>, vector<16x8xf32>, vector<16x8xf32> -> vector<16x8xf32>
    %c0_26 = arith.constant 0 : index
    %c0_27 = arith.constant 0 : index
    %c0_28 = arith.constant 0 : index
    %c0_29 = arith.constant 0 : index
    %56 = vector.load %arg6[%c0_26, %c0_27, %c0_28, %c0_29] : memref<2x4x8x32xf32, #tpu.memory_space<vmem>>, vector<1x1x8x32xf32>
    %57 = vector.shape_cast %56 : vector<1x1x8x32xf32> to vector<8x32xf32>
    %cst_30 = arith.constant dense<0.000000e+00> : vector<16x32xf32>
    %58 = tpu.matmul %55, %57, %cst_30 {dimension_numbers = #tpu.dot_dimension_numbers<[1], [0], [0], [1], [0, 0, 1, 1], [], []>} : vector<16x8xf32>, vector<8x32xf32>, vector<16x32xf32> -> vector<16x32xf32>
    %59 = arith.addf %36, %58 : vector<16x32xf32>
    %60 = vector.extract_strided_slice %35 {offsets = [0, 8], sizes = [16, 8], strides = [1, 1]} : vector<16x96xf32> to vector<16x8xf32>
    %61 = vector.extract_strided_slice %35 {offsets = [0, 40], sizes = [16, 8], strides = [1, 1]} : vector<16x96xf32> to vector<16x8xf32>
    %62 = vector.extract_strided_slice %35 {offsets = [0, 72], sizes = [16, 8], strides = [1, 1]} : vector<16x96xf32> to vector<16x8xf32>
    %63 = tpu.transpose %61, [1, 0] : vector<16x8xf32> -> vector<8x16xf32>
    %cst_31 = arith.constant dense<0.000000e+00> : vector<16x16xf32>
    %64 = tpu.matmul %60, %63, %cst_31 {dimension_numbers = #tpu.dot_dimension_numbers<[1], [0], [0], [1], [0, 0, 1, 1], [], []>} : vector<16x8xf32>, vector<8x16xf32>, vector<16x16xf32> -> vector<16x16xf32>
    %cst_32 = arith.constant 0.353553385 : f32
    %65 = vector.broadcast %cst_32 : f32 to vector<16x16xf32>
    %66 = arith.mulf %64, %65 : vector<16x16xf32>
    %67 = arith.addf %66, %1 : vector<16x16xf32>
    %cst_33 = arith.constant dense<0xFF800000> : vector<16xf32>
    %68 = vector.multi_reduction <maximumf>, %67, %cst_33 [1] : vector<16x16xf32> to vector<16xf32>
    %69 = vector.shape_cast %68 : vector<16xf32> to vector<16x1xf32>
    %70 = vector.broadcast %69 : vector<16x1xf32> to vector<16x16xf32>
    %71 = arith.subf %67, %70 : vector<16x16xf32>
    %72 = math.exp %71 : vector<16x16xf32>
    %cst_34 = arith.constant dense<0.000000e+00> : vector<16xf32>
    %73 = vector.multi_reduction <add>, %72, %cst_34 [1] : vector<16x16xf32> to vector<16xf32>
    %74 = vector.shape_cast %73 : vector<16xf32> to vector<16x1xf32>
    %75 = tpu.reciprocal %74 {approx = true} : vector<16x1xf32> -> vector<16x1xf32>
    %76 = vector.broadcast %75 : vector<16x1xf32> to vector<16x16xf32>
    %77 = arith.mulf %72, %76 : vector<16x16xf32>
    %cst_35 = arith.constant dense<0.000000e+00> : vector<16x8xf32>
    %78 = tpu.matmul %77, %62, %cst_35 {dimension_numbers = #tpu.dot_dimension_numbers<[1], [0], [0], [1], [0, 0, 1, 1], [], []>} : vector<16x16xf32>, vector<16x8xf32>, vector<16x8xf32> -> vector<16x8xf32>
    %c0_36 = arith.constant 0 : index
    %c1 = arith.constant 1 : index
    %c0_37 = arith.constant 0 : index
    %c0_38 = arith.constant 0 : index
    %79 = vector.load %arg6[%c0_36, %c1, %c0_37, %c0_38] : memref<2x4x8x32xf32, #tpu.memory_space<vmem>>, vector<1x1x8x32xf32>
    %80 = vector.shape_cast %79 : vector<1x1x8x32xf32> to vector<8x32xf32>
    %cst_39 = arith.constant dense<0.000000e+00> : vector<16x32xf32>
    %81 = tpu.matmul %78, %80, %cst_39 {dimension_numbers = #tpu.dot_dimension_numbers<[1], [0], [0], [1], [0, 0, 1, 1], [], []>} : vector<16x8xf32>, vector<8x32xf32>, vector<16x32xf32> -> vector<16x32xf32>
    %82 = arith.addf %59, %81 : vector<16x32xf32>
    %83 = vector.extract_strided_slice %35 {offsets = [0, 16], sizes = [16, 8], strides = [1, 1]} : vector<16x96xf32> to vector<16x8xf32>
    %84 = vector.extract_strided_slice %35 {offsets = [0, 48], sizes = [16, 8], strides = [1, 1]} : vector<16x96xf32> to vector<16x8xf32>
    %85 = vector.extract_strided_slice %35 {offsets = [0, 80], sizes = [16, 8], strides = [1, 1]} : vector<16x96xf32> to vector<16x8xf32>
    %86 = tpu.transpose %84, [1, 0] : vector<16x8xf32> -> vector<8x16xf32>
    %cst_40 = arith.constant dense<0.000000e+00> : vector<16x16xf32>
    %87 = tpu.matmul %83, %86, %cst_40 {dimension_numbers = #tpu.dot_dimension_numbers<[1], [0], [0], [1], [0, 0, 1, 1], [], []>} : vector<16x8xf32>, vector<8x16xf32>, vector<16x16xf32> -> vector<16x16xf32>
    %cst_41 = arith.constant 0.353553385 : f32
    %88 = vector.broadcast %cst_41 : f32 to vector<16x16xf32>
    %89 = arith.mulf %87, %88 : vector<16x16xf32>
    %90 = arith.addf %89, %1 : vector<16x16xf32>
    %cst_42 = arith.constant dense<0xFF800000> : vector<16xf32>
    %91 = vector.multi_reduction <maximumf>, %90, %cst_42 [1] : vector<16x16xf32> to vector<16xf32>
    %92 = vector.shape_cast %91 : vector<16xf32> to vector<16x1xf32>
    %93 = vector.broadcast %92 : vector<16x1xf32> to vector<16x16xf32>
    %94 = arith.subf %90, %93 : vector<16x16xf32>
    %95 = math.exp %94 : vector<16x16xf32>
    %cst_43 = arith.constant dense<0.000000e+00> : vector<16xf32>
    %96 = vector.multi_reduction <add>, %95, %cst_43 [1] : vector<16x16xf32> to vector<16xf32>
    %97 = vector.shape_cast %96 : vector<16xf32> to vector<16x1xf32>
    %98 = tpu.reciprocal %97 {approx = true} : vector<16x1xf32> -> vector<16x1xf32>
    %99 = vector.broadcast %98 : vector<16x1xf32> to vector<16x16xf32>
    %100 = arith.mulf %95, %99 : vector<16x16xf32>
    %cst_44 = arith.constant dense<0.000000e+00> : vector<16x8xf32>
    %101 = tpu.matmul %100, %85, %cst_44 {dimension_numbers = #tpu.dot_dimension_numbers<[1], [0], [0], [1], [0, 0, 1, 1], [], []>} : vector<16x16xf32>, vector<16x8xf32>, vector<16x8xf32> -> vector<16x8xf32>
    %c0_45 = arith.constant 0 : index
    %c2 = arith.constant 2 : index
    %c0_46 = arith.constant 0 : index
    %c0_47 = arith.constant 0 : index
    %102 = vector.load %arg6[%c0_45, %c2, %c0_46, %c0_47] : memref<2x4x8x32xf32, #tpu.memory_space<vmem>>, vector<1x1x8x32xf32>
    %103 = vector.shape_cast %102 : vector<1x1x8x32xf32> to vector<8x32xf32>
    %cst_48 = arith.constant dense<0.000000e+00> : vector<16x32xf32>
    %104 = tpu.matmul %101, %103, %cst_48 {dimension_numbers = #tpu.dot_dimension_numbers<[1], [0], [0], [1], [0, 0, 1, 1], [], []>} : vector<16x8xf32>, vector<8x32xf32>, vector<16x32xf32> -> vector<16x32xf32>
    %105 = arith.addf %82, %104 : vector<16x32xf32>
    %106 = vector.extract_strided_slice %35 {offsets = [0, 24], sizes = [16, 8], strides = [1, 1]} : vector<16x96xf32> to vector<16x8xf32>
    %107 = vector.extract_strided_slice %35 {offsets = [0, 56], sizes = [16, 8], strides = [1, 1]} : vector<16x96xf32> to vector<16x8xf32>
    %108 = vector.extract_strided_slice %35 {offsets = [0, 88], sizes = [16, 8], strides = [1, 1]} : vector<16x96xf32> to vector<16x8xf32>
    %109 = tpu.transpose %107, [1, 0] : vector<16x8xf32> -> vector<8x16xf32>
    %cst_49 = arith.constant dense<0.000000e+00> : vector<16x16xf32>
    %110 = tpu.matmul %106, %109, %cst_49 {dimension_numbers = #tpu.dot_dimension_numbers<[1], [0], [0], [1], [0, 0, 1, 1], [], []>} : vector<16x8xf32>, vector<8x16xf32>, vector<16x16xf32> -> vector<16x16xf32>
    %cst_50 = arith.constant 0.353553385 : f32
    %111 = vector.broadcast %cst_50 : f32 to vector<16x16xf32>
    %112 = arith.mulf %110, %111 : vector<16x16xf32>
    %113 = arith.addf %112, %1 : vector<16x16xf32>
    %cst_51 = arith.constant dense<0xFF800000> : vector<16xf32>
    %114 = vector.multi_reduction <maximumf>, %113, %cst_51 [1] : vector<16x16xf32> to vector<16xf32>
    %115 = vector.shape_cast %114 : vector<16xf32> to vector<16x1xf32>
    %116 = vector.broadcast %115 : vector<16x1xf32> to vector<16x16xf32>
    %117 = arith.subf %113, %116 : vector<16x16xf32>
    %118 = math.exp %117 : vector<16x16xf32>
    %cst_52 = arith.constant dense<0.000000e+00> : vector<16xf32>
    %119 = vector.multi_reduction <add>, %118, %cst_52 [1] : vector<16x16xf32> to vector<16xf32>
    %120 = vector.shape_cast %119 : vector<16xf32> to vector<16x1xf32>
    %121 = tpu.reciprocal %120 {approx = true} : vector<16x1xf32> -> vector<16x1xf32>
    %122 = vector.broadcast %121 : vector<16x1xf32> to vector<16x16xf32>
    %123 = arith.mulf %118, %122 : vector<16x16xf32>
    %cst_53 = arith.constant dense<0.000000e+00> : vector<16x8xf32>
    %124 = tpu.matmul %123, %108, %cst_53 {dimension_numbers = #tpu.dot_dimension_numbers<[1], [0], [0], [1], [0, 0, 1, 1], [], []>} : vector<16x16xf32>, vector<16x8xf32>, vector<16x8xf32> -> vector<16x8xf32>
    %c0_54 = arith.constant 0 : index
    %c3 = arith.constant 3 : index
    %c0_55 = arith.constant 0 : index
    %c0_56 = arith.constant 0 : index
    %125 = vector.load %arg6[%c0_54, %c3, %c0_55, %c0_56] : memref<2x4x8x32xf32, #tpu.memory_space<vmem>>, vector<1x1x8x32xf32>
    %126 = vector.shape_cast %125 : vector<1x1x8x32xf32> to vector<8x32xf32>
    %cst_57 = arith.constant dense<0.000000e+00> : vector<16x32xf32>
    %127 = tpu.matmul %124, %126, %cst_57 {dimension_numbers = #tpu.dot_dimension_numbers<[1], [0], [0], [1], [0, 0, 1, 1], [], []>} : vector<16x8xf32>, vector<8x32xf32>, vector<16x32xf32> -> vector<16x32xf32>
    %128 = arith.addf %105, %127 : vector<16x32xf32>
    %129 = arith.addf %0, %128 : vector<16x32xf32>
    %c0_58 = arith.constant 0 : index
    %c0_59 = arith.constant 0 : index
    %c0_60 = arith.constant 0 : index
    %130 = vector.load %arg7[%c0_58, %c0_59, %c0_60] : memref<2x1x32xf32, #tpu.memory_space<vmem>>, vector<1x1x32xf32>
    %131 = vector.shape_cast %130 : vector<1x1x32xf32> to vector<1x32xf32>
    %132 = vector.broadcast %131 : vector<1x32xf32> to vector<16x32xf32>
    %133 = arith.addf %129, %132 : vector<16x32xf32>
    %c0_61 = arith.constant 0 : index
    %c0_62 = arith.constant 0 : index
    %c0_63 = arith.constant 0 : index
    %134 = vector.load %arg8[%c0_61, %c0_62, %c0_63] : memref<2x1x32xf32, #tpu.memory_space<vmem>>, vector<1x1x32xf32>
    %135 = vector.shape_cast %134 : vector<1x1x32xf32> to vector<1x32xf32>
    %c0_64 = arith.constant 0 : index
    %c0_65 = arith.constant 0 : index
    %c0_66 = arith.constant 0 : index
    %136 = vector.load %arg9[%c0_64, %c0_65, %c0_66] : memref<2x1x32xf32, #tpu.memory_space<vmem>>, vector<1x1x32xf32>
    %137 = vector.shape_cast %136 : vector<1x1x32xf32> to vector<1x32xf32>
    %cst_67 = arith.constant dense<0.000000e+00> : vector<16xf32>
    %138 = vector.multi_reduction <add>, %133, %cst_67 [1] : vector<16x32xf32> to vector<16xf32>
    %139 = vector.shape_cast %138 : vector<16xf32> to vector<16x1xf32>
    %cst_68 = arith.constant 3.200000e+01 : f32
    %140 = vector.broadcast %cst_68 : f32 to vector<16x1xf32>
    %141 = arith.divf %139, %140 : vector<16x1xf32>
    %142 = vector.broadcast %141 : vector<16x1xf32> to vector<16x32xf32>
    %143 = arith.subf %133, %142 : vector<16x32xf32>
    %144 = arith.mulf %143, %143 : vector<16x32xf32>
    %cst_69 = arith.constant dense<0.000000e+00> : vector<16xf32>
    %145 = vector.multi_reduction <add>, %144, %cst_69 [1] : vector<16x32xf32> to vector<16xf32>
    %146 = vector.shape_cast %145 : vector<16xf32> to vector<16x1xf32>
    %cst_70 = arith.constant 0.0322580636 : f32
    %147 = vector.broadcast %cst_70 : f32 to vector<16x1xf32>
    %148 = arith.mulf %146, %147 : vector<16x1xf32>
    %149 = math.sqrt %148 : vector<16x1xf32>
    %cst_71 = arith.constant 9.99999997E-7 : f32
    %150 = vector.broadcast %cst_71 : f32 to vector<16x1xf32>
    %151 = arith.addf %149, %150 : vector<16x1xf32>
    %152 = tpu.reciprocal %151 {approx = true} : vector<16x1xf32> -> vector<16x1xf32>
    %153 = vector.broadcast %141 : vector<16x1xf32> to vector<16x32xf32>
    %154 = arith.subf %133, %153 : vector<16x32xf32>
    %155 = vector.broadcast %135 : vector<1x32xf32> to vector<16x32xf32>
    %156 = arith.mulf %155, %154 : vector<16x32xf32>
    %157 = vector.broadcast %152 : vector<16x1xf32> to vector<16x32xf32>
    %158 = arith.mulf %156, %157 : vector<16x32xf32>
    %159 = vector.broadcast %137 : vector<1x32xf32> to vector<16x32xf32>
    %160 = arith.addf %158, %159 : vector<16x32xf32>
    %c0_72 = arith.constant 0 : index
    %c0_73 = arith.constant 0 : index
    %c0_74 = arith.constant 0 : index
    %161 = vector.load %arg10[%c0_72, %c0_73, %c0_74] : memref<2x32x64xf32, #tpu.memory_space<vmem>>, vector<1x32x64xf32>
    %162 = vector.shape_cast %161 : vector<1x32x64xf32> to vector<32x64xf32>
    %cst_75 = arith.constant dense<0.000000e+00> : vector<16x64xf32>
    %163 = tpu.matmul %160, %162, %cst_75 {dimension_numbers = #tpu.dot_dimension_numbers<[1], [0], [0], [1], [0, 0, 1, 1], [], []>} : vector<16x32xf32>, vector<32x64xf32>, vector<16x64xf32> -> vector<16x64xf32>
    %c0_76 = arith.constant 0 : index
    %c0_77 = arith.constant 0 : index
    %c0_78 = arith.constant 0 : index
    %164 = vector.load %arg11[%c0_76, %c0_77, %c0_78] : memref<2x1x64xf32, #tpu.memory_space<vmem>>, vector<1x1x64xf32>
    %165 = vector.shape_cast %164 : vector<1x1x64xf32> to vector<1x64xf32>
    %166 = vector.broadcast %165 : vector<1x64xf32> to vector<16x64xf32>
    %167 = arith.addf %163, %166 : vector<16x64xf32>
    %cst_79 = arith.constant 0.000000e+00 : f32
    %168 = vector.broadcast %cst_79 : f32 to vector<16x64xf32>
    %169 = arith.maximumf %167, %168 : vector<16x64xf32>
    %c0_80 = arith.constant 0 : index
    %c0_81 = arith.constant 0 : index
    %c0_82 = arith.constant 0 : index
    %170 = vector.load %arg12[%c0_80, %c0_81, %c0_82] : memref<2x64x32xf32, #tpu.memory_space<vmem>>, vector<1x64x32xf32>
    %171 = vector.shape_cast %170 : vector<1x64x32xf32> to vector<64x32xf32>
    %cst_83 = arith.constant dense<0.000000e+00> : vector<16x32xf32>
    %172 = tpu.matmul %169, %171, %cst_83 {dimension_numbers = #tpu.dot_dimension_numbers<[1], [0], [0], [1], [0, 0, 1, 1], [], []>} : vector<16x64xf32>, vector<64x32xf32>, vector<16x32xf32> -> vector<16x32xf32>
    %173 = arith.addf %133, %172 : vector<16x32xf32>
    %c0_84 = arith.constant 0 : index
    %c0_85 = arith.constant 0 : index
    %c0_86 = arith.constant 0 : index
    %174 = vector.load %arg13[%c0_84, %c0_85, %c0_86] : memref<2x1x32xf32, #tpu.memory_space<vmem>>, vector<1x1x32xf32>
    %175 = vector.shape_cast %174 : vector<1x1x32xf32> to vector<1x32xf32>
    %176 = vector.broadcast %175 : vector<1x32xf32> to vector<16x32xf32>
    %177 = arith.addf %173, %176 : vector<16x32xf32>
    %c1_87 = arith.constant 1 : index
    %c0_88 = arith.constant 0 : index
    %c0_89 = arith.constant 0 : index
    %178 = vector.load %arg2[%c1_87, %c0_88, %c0_89] : memref<2x1x32xf32, #tpu.memory_space<vmem>>, vector<1x1x32xf32>
    %179 = vector.shape_cast %178 : vector<1x1x32xf32> to vector<1x32xf32>
    %c1_90 = arith.constant 1 : index
    %c0_91 = arith.constant 0 : index
    %c0_92 = arith.constant 0 : index
    %180 = vector.load %arg3[%c1_90, %c0_91, %c0_92] : memref<2x1x32xf32, #tpu.memory_space<vmem>>, vector<1x1x32xf32>
    %181 = vector.shape_cast %180 : vector<1x1x32xf32> to vector<1x32xf32>
    %cst_93 = arith.constant dense<0.000000e+00> : vector<16xf32>
    %182 = vector.multi_reduction <add>, %177, %cst_93 [1] : vector<16x32xf32> to vector<16xf32>
    %183 = vector.shape_cast %182 : vector<16xf32> to vector<16x1xf32>
    %cst_94 = arith.constant 3.200000e+01 : f32
    %184 = vector.broadcast %cst_94 : f32 to vector<16x1xf32>
    %185 = arith.divf %183, %184 : vector<16x1xf32>
    %186 = vector.broadcast %185 : vector<16x1xf32> to vector<16x32xf32>
    %187 = arith.subf %177, %186 : vector<16x32xf32>
    %188 = arith.mulf %187, %187 : vector<16x32xf32>
    %cst_95 = arith.constant dense<0.000000e+00> : vector<16xf32>
    %189 = vector.multi_reduction <add>, %188, %cst_95 [1] : vector<16x32xf32> to vector<16xf32>
    %190 = vector.shape_cast %189 : vector<16xf32> to vector<16x1xf32>
    %cst_96 = arith.constant 0.0322580636 : f32
    %191 = vector.broadcast %cst_96 : f32 to vector<16x1xf32>
    %192 = arith.mulf %190, %191 : vector<16x1xf32>
    %193 = math.sqrt %192 : vector<16x1xf32>
    %cst_97 = arith.constant 9.99999997E-7 : f32
    %194 = vector.broadcast %cst_97 : f32 to vector<16x1xf32>
    %195 = arith.addf %193, %194 : vector<16x1xf32>
    %196 = tpu.reciprocal %195 {approx = true} : vector<16x1xf32> -> vector<16x1xf32>
    %197 = vector.broadcast %185 : vector<16x1xf32> to vector<16x32xf32>
    %198 = arith.subf %177, %197 : vector<16x32xf32>
    %199 = vector.broadcast %179 : vector<1x32xf32> to vector<16x32xf32>
    %200 = arith.mulf %199, %198 : vector<16x32xf32>
    %201 = vector.broadcast %196 : vector<16x1xf32> to vector<16x32xf32>
    %202 = arith.mulf %200, %201 : vector<16x32xf32>
    %203 = vector.broadcast %181 : vector<1x32xf32> to vector<16x32xf32>
    %204 = arith.addf %202, %203 : vector<16x32xf32>
    %c1_98 = arith.constant 1 : index
    %c0_99 = arith.constant 0 : index
    %c0_100 = arith.constant 0 : index
    %205 = vector.load %arg4[%c1_98, %c0_99, %c0_100] : memref<2x32x96xf32, #tpu.memory_space<vmem>>, vector<1x32x96xf32>
    %206 = vector.shape_cast %205 : vector<1x32x96xf32> to vector<32x96xf32>
    %cst_101 = arith.constant dense<0.000000e+00> : vector<16x96xf32>
    %207 = tpu.matmul %204, %206, %cst_101 {dimension_numbers = #tpu.dot_dimension_numbers<[1], [0], [0], [1], [0, 0, 1, 1], [], []>} : vector<16x32xf32>, vector<32x96xf32>, vector<16x96xf32> -> vector<16x96xf32>
    %c1_102 = arith.constant 1 : index
    %c0_103 = arith.constant 0 : index
    %c0_104 = arith.constant 0 : index
    %208 = vector.load %arg5[%c1_102, %c0_103, %c0_104] : memref<2x1x96xf32, #tpu.memory_space<vmem>>, vector<1x1x96xf32>
    %209 = vector.shape_cast %208 : vector<1x1x96xf32> to vector<1x96xf32>
    %210 = vector.broadcast %209 : vector<1x96xf32> to vector<16x96xf32>
    %211 = arith.addf %207, %210 : vector<16x96xf32>
    %cst_105 = arith.constant 0.000000e+00 : f32
    %212 = vector.broadcast %cst_105 : f32 to vector<16x32xf32>
    %213 = vector.extract_strided_slice %211 {offsets = [0, 0], sizes = [16, 8], strides = [1, 1]} : vector<16x96xf32> to vector<16x8xf32>
    %214 = vector.extract_strided_slice %211 {offsets = [0, 32], sizes = [16, 8], strides = [1, 1]} : vector<16x96xf32> to vector<16x8xf32>
    %215 = vector.extract_strided_slice %211 {offsets = [0, 64], sizes = [16, 8], strides = [1, 1]} : vector<16x96xf32> to vector<16x8xf32>
    %216 = tpu.transpose %214, [1, 0] : vector<16x8xf32> -> vector<8x16xf32>
    %cst_106 = arith.constant dense<0.000000e+00> : vector<16x16xf32>
    %217 = tpu.matmul %213, %216, %cst_106 {dimension_numbers = #tpu.dot_dimension_numbers<[1], [0], [0], [1], [0, 0, 1, 1], [], []>} : vector<16x8xf32>, vector<8x16xf32>, vector<16x16xf32> -> vector<16x16xf32>
    %cst_107 = arith.constant 0.353553385 : f32
    %218 = vector.broadcast %cst_107 : f32 to vector<16x16xf32>
    %219 = arith.mulf %217, %218 : vector<16x16xf32>
    %220 = arith.addf %219, %1 : vector<16x16xf32>
    %cst_108 = arith.constant dense<0xFF800000> : vector<16xf32>
    %221 = vector.multi_reduction <maximumf>, %220, %cst_108 [1] : vector<16x16xf32> to vector<16xf32>
    %222 = vector.shape_cast %221 : vector<16xf32> to vector<16x1xf32>
    %223 = vector.broadcast %222 : vector<16x1xf32> to vector<16x16xf32>
    %224 = arith.subf %220, %223 : vector<16x16xf32>
    %225 = math.exp %224 : vector<16x16xf32>
    %cst_109 = arith.constant dense<0.000000e+00> : vector<16xf32>
    %226 = vector.multi_reduction <add>, %225, %cst_109 [1] : vector<16x16xf32> to vector<16xf32>
    %227 = vector.shape_cast %226 : vector<16xf32> to vector<16x1xf32>
    %228 = tpu.reciprocal %227 {approx = true} : vector<16x1xf32> -> vector<16x1xf32>
    %229 = vector.broadcast %228 : vector<16x1xf32> to vector<16x16xf32>
    %230 = arith.mulf %225, %229 : vector<16x16xf32>
    %cst_110 = arith.constant dense<0.000000e+00> : vector<16x8xf32>
    %231 = tpu.matmul %230, %215, %cst_110 {dimension_numbers = #tpu.dot_dimension_numbers<[1], [0], [0], [1], [0, 0, 1, 1], [], []>} : vector<16x16xf32>, vector<16x8xf32>, vector<16x8xf32> -> vector<16x8xf32>
    %c1_111 = arith.constant 1 : index
    %c0_112 = arith.constant 0 : index
    %c0_113 = arith.constant 0 : index
    %c0_114 = arith.constant 0 : index
    %232 = vector.load %arg6[%c1_111, %c0_112, %c0_113, %c0_114] : memref<2x4x8x32xf32, #tpu.memory_space<vmem>>, vector<1x1x8x32xf32>
    %233 = vector.shape_cast %232 : vector<1x1x8x32xf32> to vector<8x32xf32>
    %cst_115 = arith.constant dense<0.000000e+00> : vector<16x32xf32>
    %234 = tpu.matmul %231, %233, %cst_115 {dimension_numbers = #tpu.dot_dimension_numbers<[1], [0], [0], [1], [0, 0, 1, 1], [], []>} : vector<16x8xf32>, vector<8x32xf32>, vector<16x32xf32> -> vector<16x32xf32>
    %235 = arith.addf %212, %234 : vector<16x32xf32>
    %236 = vector.extract_strided_slice %211 {offsets = [0, 8], sizes = [16, 8], strides = [1, 1]} : vector<16x96xf32> to vector<16x8xf32>
    %237 = vector.extract_strided_slice %211 {offsets = [0, 40], sizes = [16, 8], strides = [1, 1]} : vector<16x96xf32> to vector<16x8xf32>
    %238 = vector.extract_strided_slice %211 {offsets = [0, 72], sizes = [16, 8], strides = [1, 1]} : vector<16x96xf32> to vector<16x8xf32>
    %239 = tpu.transpose %237, [1, 0] : vector<16x8xf32> -> vector<8x16xf32>
    %cst_116 = arith.constant dense<0.000000e+00> : vector<16x16xf32>
    %240 = tpu.matmul %236, %239, %cst_116 {dimension_numbers = #tpu.dot_dimension_numbers<[1], [0], [0], [1], [0, 0, 1, 1], [], []>} : vector<16x8xf32>, vector<8x16xf32>, vector<16x16xf32> -> vector<16x16xf32>
    %cst_117 = arith.constant 0.353553385 : f32
    %241 = vector.broadcast %cst_117 : f32 to vector<16x16xf32>
    %242 = arith.mulf %240, %241 : vector<16x16xf32>
    %243 = arith.addf %242, %1 : vector<16x16xf32>
    %cst_118 = arith.constant dense<0xFF800000> : vector<16xf32>
    %244 = vector.multi_reduction <maximumf>, %243, %cst_118 [1] : vector<16x16xf32> to vector<16xf32>
    %245 = vector.shape_cast %244 : vector<16xf32> to vector<16x1xf32>
    %246 = vector.broadcast %245 : vector<16x1xf32> to vector<16x16xf32>
    %247 = arith.subf %243, %246 : vector<16x16xf32>
    %248 = math.exp %247 : vector<16x16xf32>
    %cst_119 = arith.constant dense<0.000000e+00> : vector<16xf32>
    %249 = vector.multi_reduction <add>, %248, %cst_119 [1] : vector<16x16xf32> to vector<16xf32>
    %250 = vector.shape_cast %249 : vector<16xf32> to vector<16x1xf32>
    %251 = tpu.reciprocal %250 {approx = true} : vector<16x1xf32> -> vector<16x1xf32>
    %252 = vector.broadcast %251 : vector<16x1xf32> to vector<16x16xf32>
    %253 = arith.mulf %248, %252 : vector<16x16xf32>
    %cst_120 = arith.constant dense<0.000000e+00> : vector<16x8xf32>
    %254 = tpu.matmul %253, %238, %cst_120 {dimension_numbers = #tpu.dot_dimension_numbers<[1], [0], [0], [1], [0, 0, 1, 1], [], []>} : vector<16x16xf32>, vector<16x8xf32>, vector<16x8xf32> -> vector<16x8xf32>
    %c1_121 = arith.constant 1 : index
    %c1_122 = arith.constant 1 : index
    %c0_123 = arith.constant 0 : index
    %c0_124 = arith.constant 0 : index
    %255 = vector.load %arg6[%c1_121, %c1_122, %c0_123, %c0_124] : memref<2x4x8x32xf32, #tpu.memory_space<vmem>>, vector<1x1x8x32xf32>
    %256 = vector.shape_cast %255 : vector<1x1x8x32xf32> to vector<8x32xf32>
    %cst_125 = arith.constant dense<0.000000e+00> : vector<16x32xf32>
    %257 = tpu.matmul %254, %256, %cst_125 {dimension_numbers = #tpu.dot_dimension_numbers<[1], [0], [0], [1], [0, 0, 1, 1], [], []>} : vector<16x8xf32>, vector<8x32xf32>, vector<16x32xf32> -> vector<16x32xf32>
    %258 = arith.addf %235, %257 : vector<16x32xf32>
    %259 = vector.extract_strided_slice %211 {offsets = [0, 16], sizes = [16, 8], strides = [1, 1]} : vector<16x96xf32> to vector<16x8xf32>
    %260 = vector.extract_strided_slice %211 {offsets = [0, 48], sizes = [16, 8], strides = [1, 1]} : vector<16x96xf32> to vector<16x8xf32>
    %261 = vector.extract_strided_slice %211 {offsets = [0, 80], sizes = [16, 8], strides = [1, 1]} : vector<16x96xf32> to vector<16x8xf32>
    %262 = tpu.transpose %260, [1, 0] : vector<16x8xf32> -> vector<8x16xf32>
    %cst_126 = arith.constant dense<0.000000e+00> : vector<16x16xf32>
    %263 = tpu.matmul %259, %262, %cst_126 {dimension_numbers = #tpu.dot_dimension_numbers<[1], [0], [0], [1], [0, 0, 1, 1], [], []>} : vector<16x8xf32>, vector<8x16xf32>, vector<16x16xf32> -> vector<16x16xf32>
    %cst_127 = arith.constant 0.353553385 : f32
    %264 = vector.broadcast %cst_127 : f32 to vector<16x16xf32>
    %265 = arith.mulf %263, %264 : vector<16x16xf32>
    %266 = arith.addf %265, %1 : vector<16x16xf32>
    %cst_128 = arith.constant dense<0xFF800000> : vector<16xf32>
    %267 = vector.multi_reduction <maximumf>, %266, %cst_128 [1] : vector<16x16xf32> to vector<16xf32>
    %268 = vector.shape_cast %267 : vector<16xf32> to vector<16x1xf32>
    %269 = vector.broadcast %268 : vector<16x1xf32> to vector<16x16xf32>
    %270 = arith.subf %266, %269 : vector<16x16xf32>
    %271 = math.exp %270 : vector<16x16xf32>
    %cst_129 = arith.constant dense<0.000000e+00> : vector<16xf32>
    %272 = vector.multi_reduction <add>, %271, %cst_129 [1] : vector<16x16xf32> to vector<16xf32>
    %273 = vector.shape_cast %272 : vector<16xf32> to vector<16x1xf32>
    %274 = tpu.reciprocal %273 {approx = true} : vector<16x1xf32> -> vector<16x1xf32>
    %275 = vector.broadcast %274 : vector<16x1xf32> to vector<16x16xf32>
    %276 = arith.mulf %271, %275 : vector<16x16xf32>
    %cst_130 = arith.constant dense<0.000000e+00> : vector<16x8xf32>
    %277 = tpu.matmul %276, %261, %cst_130 {dimension_numbers = #tpu.dot_dimension_numbers<[1], [0], [0], [1], [0, 0, 1, 1], [], []>} : vector<16x16xf32>, vector<16x8xf32>, vector<16x8xf32> -> vector<16x8xf32>
    %c1_131 = arith.constant 1 : index
    %c2_132 = arith.constant 2 : index
    %c0_133 = arith.constant 0 : index
    %c0_134 = arith.constant 0 : index
    %278 = vector.load %arg6[%c1_131, %c2_132, %c0_133, %c0_134] : memref<2x4x8x32xf32, #tpu.memory_space<vmem>>, vector<1x1x8x32xf32>
    %279 = vector.shape_cast %278 : vector<1x1x8x32xf32> to vector<8x32xf32>
    %cst_135 = arith.constant dense<0.000000e+00> : vector<16x32xf32>
    %280 = tpu.matmul %277, %279, %cst_135 {dimension_numbers = #tpu.dot_dimension_numbers<[1], [0], [0], [1], [0, 0, 1, 1], [], []>} : vector<16x8xf32>, vector<8x32xf32>, vector<16x32xf32> -> vector<16x32xf32>
    %281 = arith.addf %258, %280 : vector<16x32xf32>
    %282 = vector.extract_strided_slice %211 {offsets = [0, 24], sizes = [16, 8], strides = [1, 1]} : vector<16x96xf32> to vector<16x8xf32>
    %283 = vector.extract_strided_slice %211 {offsets = [0, 56], sizes = [16, 8], strides = [1, 1]} : vector<16x96xf32> to vector<16x8xf32>
    %284 = vector.extract_strided_slice %211 {offsets = [0, 88], sizes = [16, 8], strides = [1, 1]} : vector<16x96xf32> to vector<16x8xf32>
    %285 = tpu.transpose %283, [1, 0] : vector<16x8xf32> -> vector<8x16xf32>
    %cst_136 = arith.constant dense<0.000000e+00> : vector<16x16xf32>
    %286 = tpu.matmul %282, %285, %cst_136 {dimension_numbers = #tpu.dot_dimension_numbers<[1], [0], [0], [1], [0, 0, 1, 1], [], []>} : vector<16x8xf32>, vector<8x16xf32>, vector<16x16xf32> -> vector<16x16xf32>
    %cst_137 = arith.constant 0.353553385 : f32
    %287 = vector.broadcast %cst_137 : f32 to vector<16x16xf32>
    %288 = arith.mulf %286, %287 : vector<16x16xf32>
    %289 = arith.addf %288, %1 : vector<16x16xf32>
    %cst_138 = arith.constant dense<0xFF800000> : vector<16xf32>
    %290 = vector.multi_reduction <maximumf>, %289, %cst_138 [1] : vector<16x16xf32> to vector<16xf32>
    %291 = vector.shape_cast %290 : vector<16xf32> to vector<16x1xf32>
    %292 = vector.broadcast %291 : vector<16x1xf32> to vector<16x16xf32>
    %293 = arith.subf %289, %292 : vector<16x16xf32>
    %294 = math.exp %293 : vector<16x16xf32>
    %cst_139 = arith.constant dense<0.000000e+00> : vector<16xf32>
    %295 = vector.multi_reduction <add>, %294, %cst_139 [1] : vector<16x16xf32> to vector<16xf32>
    %296 = vector.shape_cast %295 : vector<16xf32> to vector<16x1xf32>
    %297 = tpu.reciprocal %296 {approx = true} : vector<16x1xf32> -> vector<16x1xf32>
    %298 = vector.broadcast %297 : vector<16x1xf32> to vector<16x16xf32>
    %299 = arith.mulf %294, %298 : vector<16x16xf32>
    %cst_140 = arith.constant dense<0.000000e+00> : vector<16x8xf32>
    %300 = tpu.matmul %299, %284, %cst_140 {dimension_numbers = #tpu.dot_dimension_numbers<[1], [0], [0], [1], [0, 0, 1, 1], [], []>} : vector<16x16xf32>, vector<16x8xf32>, vector<16x8xf32> -> vector<16x8xf32>
    %c1_141 = arith.constant 1 : index
    %c3_142 = arith.constant 3 : index
    %c0_143 = arith.constant 0 : index
    %c0_144 = arith.constant 0 : index
    %301 = vector.load %arg6[%c1_141, %c3_142, %c0_143, %c0_144] : memref<2x4x8x32xf32, #tpu.memory_space<vmem>>, vector<1x1x8x32xf32>
    %302 = vector.shape_cast %301 : vector<1x1x8x32xf32> to vector<8x32xf32>
    %cst_145 = arith.constant dense<0.000000e+00> : vector<16x32xf32>
    %303 = tpu.matmul %300, %302, %cst_145 {dimension_numbers = #tpu.dot_dimension_numbers<[1], [0], [0], [1], [0, 0, 1, 1], [], []>} : vector<16x8xf32>, vector<8x32xf32>, vector<16x32xf32> -> vector<16x32xf32>
    %304 = arith.addf %281, %303 : vector<16x32xf32>
    %305 = arith.addf %177, %304 : vector<16x32xf32>
    %c1_146 = arith.constant 1 : index
    %c0_147 = arith.constant 0 : index
    %c0_148 = arith.constant 0 : index
    %306 = vector.load %arg7[%c1_146, %c0_147, %c0_148] : memref<2x1x32xf32, #tpu.memory_space<vmem>>, vector<1x1x32xf32>
    %307 = vector.shape_cast %306 : vector<1x1x32xf32> to vector<1x32xf32>
    %308 = vector.broadcast %307 : vector<1x32xf32> to vector<16x32xf32>
    %309 = arith.addf %305, %308 : vector<16x32xf32>
    %c1_149 = arith.constant 1 : index
    %c0_150 = arith.constant 0 : index
    %c0_151 = arith.constant 0 : index
    %310 = vector.load %arg8[%c1_149, %c0_150, %c0_151] : memref<2x1x32xf32, #tpu.memory_space<vmem>>, vector<1x1x32xf32>
    %311 = vector.shape_cast %310 : vector<1x1x32xf32> to vector<1x32xf32>
    %c1_152 = arith.constant 1 : index
    %c0_153 = arith.constant 0 : index
    %c0_154 = arith.constant 0 : index
    %312 = vector.load %arg9[%c1_152, %c0_153, %c0_154] : memref<2x1x32xf32, #tpu.memory_space<vmem>>, vector<1x1x32xf32>
    %313 = vector.shape_cast %312 : vector<1x1x32xf32> to vector<1x32xf32>
    %cst_155 = arith.constant dense<0.000000e+00> : vector<16xf32>
    %314 = vector.multi_reduction <add>, %309, %cst_155 [1] : vector<16x32xf32> to vector<16xf32>
    %315 = vector.shape_cast %314 : vector<16xf32> to vector<16x1xf32>
    %cst_156 = arith.constant 3.200000e+01 : f32
    %316 = vector.broadcast %cst_156 : f32 to vector<16x1xf32>
    %317 = arith.divf %315, %316 : vector<16x1xf32>
    %318 = vector.broadcast %317 : vector<16x1xf32> to vector<16x32xf32>
    %319 = arith.subf %309, %318 : vector<16x32xf32>
    %320 = arith.mulf %319, %319 : vector<16x32xf32>
    %cst_157 = arith.constant dense<0.000000e+00> : vector<16xf32>
    %321 = vector.multi_reduction <add>, %320, %cst_157 [1] : vector<16x32xf32> to vector<16xf32>
    %322 = vector.shape_cast %321 : vector<16xf32> to vector<16x1xf32>
    %cst_158 = arith.constant 0.0322580636 : f32
    %323 = vector.broadcast %cst_158 : f32 to vector<16x1xf32>
    %324 = arith.mulf %322, %323 : vector<16x1xf32>
    %325 = math.sqrt %324 : vector<16x1xf32>
    %cst_159 = arith.constant 9.99999997E-7 : f32
    %326 = vector.broadcast %cst_159 : f32 to vector<16x1xf32>
    %327 = arith.addf %325, %326 : vector<16x1xf32>
    %328 = tpu.reciprocal %327 {approx = true} : vector<16x1xf32> -> vector<16x1xf32>
    %329 = vector.broadcast %317 : vector<16x1xf32> to vector<16x32xf32>
    %330 = arith.subf %309, %329 : vector<16x32xf32>
    %331 = vector.broadcast %311 : vector<1x32xf32> to vector<16x32xf32>
    %332 = arith.mulf %331, %330 : vector<16x32xf32>
    %333 = vector.broadcast %328 : vector<16x1xf32> to vector<16x32xf32>
    %334 = arith.mulf %332, %333 : vector<16x32xf32>
    %335 = vector.broadcast %313 : vector<1x32xf32> to vector<16x32xf32>
    %336 = arith.addf %334, %335 : vector<16x32xf32>
    %c1_160 = arith.constant 1 : index
    %c0_161 = arith.constant 0 : index
    %c0_162 = arith.constant 0 : index
    %337 = vector.load %arg10[%c1_160, %c0_161, %c0_162] : memref<2x32x64xf32, #tpu.memory_space<vmem>>, vector<1x32x64xf32>
    %338 = vector.shape_cast %337 : vector<1x32x64xf32> to vector<32x64xf32>
    %cst_163 = arith.constant dense<0.000000e+00> : vector<16x64xf32>
    %339 = tpu.matmul %336, %338, %cst_163 {dimension_numbers = #tpu.dot_dimension_numbers<[1], [0], [0], [1], [0, 0, 1, 1], [], []>} : vector<16x32xf32>, vector<32x64xf32>, vector<16x64xf32> -> vector<16x64xf32>
    %c1_164 = arith.constant 1 : index
    %c0_165 = arith.constant 0 : index
    %c0_166 = arith.constant 0 : index
    %340 = vector.load %arg11[%c1_164, %c0_165, %c0_166] : memref<2x1x64xf32, #tpu.memory_space<vmem>>, vector<1x1x64xf32>
    %341 = vector.shape_cast %340 : vector<1x1x64xf32> to vector<1x64xf32>
    %342 = vector.broadcast %341 : vector<1x64xf32> to vector<16x64xf32>
    %343 = arith.addf %339, %342 : vector<16x64xf32>
    %cst_167 = arith.constant 0.000000e+00 : f32
    %344 = vector.broadcast %cst_167 : f32 to vector<16x64xf32>
    %345 = arith.maximumf %343, %344 : vector<16x64xf32>
    %c1_168 = arith.constant 1 : index
    %c0_169 = arith.constant 0 : index
    %c0_170 = arith.constant 0 : index
    %346 = vector.load %arg12[%c1_168, %c0_169, %c0_170] : memref<2x64x32xf32, #tpu.memory_space<vmem>>, vector<1x64x32xf32>
    %347 = vector.shape_cast %346 : vector<1x64x32xf32> to vector<64x32xf32>
    %cst_171 = arith.constant dense<0.000000e+00> : vector<16x32xf32>
    %348 = tpu.matmul %345, %347, %cst_171 {dimension_numbers = #tpu.dot_dimension_numbers<[1], [0], [0], [1], [0, 0, 1, 1], [], []>} : vector<16x64xf32>, vector<64x32xf32>, vector<16x32xf32> -> vector<16x32xf32>
    %349 = arith.addf %309, %348 : vector<16x32xf32>
    %c1_172 = arith.constant 1 : index
    %c0_173 = arith.constant 0 : index
    %c0_174 = arith.constant 0 : index
    %350 = vector.load %arg13[%c1_172, %c0_173, %c0_174] : memref<2x1x32xf32, #tpu.memory_space<vmem>>, vector<1x1x32xf32>
    %351 = vector.shape_cast %350 : vector<1x1x32xf32> to vector<1x32xf32>
    %352 = vector.broadcast %351 : vector<1x32xf32> to vector<16x32xf32>
    %353 = arith.addf %349, %352 : vector<16x32xf32>
    %c0_175 = arith.constant 0 : index
    %c0_176 = arith.constant 0 : index
    %354 = vector.load %arg14[%c0_175, %c0_176] : memref<1x32xf32, #tpu.memory_space<vmem>>, vector<1x32xf32>
    %c0_177 = arith.constant 0 : index
    %c0_178 = arith.constant 0 : index
    %355 = vector.load %arg15[%c0_177, %c0_178] : memref<1x32xf32, #tpu.memory_space<vmem>>, vector<1x32xf32>
    %cst_179 = arith.constant dense<0.000000e+00> : vector<16xf32>
    %356 = vector.multi_reduction <add>, %353, %cst_179 [1] : vector<16x32xf32> to vector<16xf32>
    %357 = vector.shape_cast %356 : vector<16xf32> to vector<16x1xf32>
    %cst_180 = arith.constant 3.200000e+01 : f32
    %358 = vector.broadcast %cst_180 : f32 to vector<16x1xf32>
    %359 = arith.divf %357, %358 : vector<16x1xf32>
    %360 = vector.broadcast %359 : vector<16x1xf32> to vector<16x32xf32>
    %361 = arith.subf %353, %360 : vector<16x32xf32>
    %362 = arith.mulf %361, %361 : vector<16x32xf32>
    %cst_181 = arith.constant dense<0.000000e+00> : vector<16xf32>
    %363 = vector.multi_reduction <add>, %362, %cst_181 [1] : vector<16x32xf32> to vector<16xf32>
    %364 = vector.shape_cast %363 : vector<16xf32> to vector<16x1xf32>
    %cst_182 = arith.constant 0.0322580636 : f32
    %365 = vector.broadcast %cst_182 : f32 to vector<16x1xf32>
    %366 = arith.mulf %364, %365 : vector<16x1xf32>
    %367 = math.sqrt %366 : vector<16x1xf32>
    %cst_183 = arith.constant 9.99999997E-7 : f32
    %368 = vector.broadcast %cst_183 : f32 to vector<16x1xf32>
    %369 = arith.addf %367, %368 : vector<16x1xf32>
    %370 = tpu.reciprocal %369 {approx = true} : vector<16x1xf32> -> vector<16x1xf32>
    %371 = vector.broadcast %359 : vector<16x1xf32> to vector<16x32xf32>
    %372 = arith.subf %353, %371 : vector<16x32xf32>
    %373 = vector.broadcast %354 : vector<1x32xf32> to vector<16x32xf32>
    %374 = arith.mulf %373, %372 : vector<16x32xf32>
    %375 = vector.broadcast %370 : vector<16x1xf32> to vector<16x32xf32>
    %376 = arith.mulf %374, %375 : vector<16x32xf32>
    %377 = vector.broadcast %355 : vector<1x32xf32> to vector<16x32xf32>
    %378 = arith.addf %376, %377 : vector<16x32xf32>
    %c0_184 = arith.constant 0 : index
    %c0_185 = arith.constant 0 : index
    %379 = vector.load %arg16[%c0_184, %c0_185] : memref<16x32xf32, #tpu.memory_space<vmem>>, vector<16x32xf32>
    tpu.vector_store %arg16[%c0_184, %c0_185], %378 {strides = array<i32>} : memref<16x32xf32, #tpu.memory_space<vmem>>, vector<16x32xf32>,
    return
  }
}

</mosaic_0001>

<bundles_post_ra>
// kernel: encoder_forward.1
= control target key start
LH: loop header
LB: loop body
LE: loop exit
PB: predicated region body
PF: predicated region fallthrough
CT: control target
= control target key end

     0   :  { %s2622_s0 = inlined_call_operand.vmem [shape: f32[16,32], index: 0, kind: input, shape index: {}]   ;;  %s2623_s1 = inlined_call_operand.vmem [shape: f32[16,16], index: 1, kind: input, shape index: {}]   ;;  %s2624_s2 = inlined_call_operand.vmem [shape: f32[2,1,32], index: 2, kind: input, shape index: {}]   ;;  %s2625_s3 = inlined_call_operand.vmem [shape: f32[2,1,32], index: 3, kind: input, shape index: {}]   ;;  %s2626_s4 = inlined_call_operand.vmem [shape: f32[2,32,96], index: 4, kind: input, shape index: {}]   ;;  %s2627_s5 = inlined_call_operand.vmem [shape: f32[2,1,96], index: 5, kind: input, shape index: {}]   ;;  %s2628_s6 = inlined_call_operand.vmem [shape: f32[2,4,8,32], index: 6, kind: input, shape index: {}]   ;;  %s2629_s7 = inlined_call_operand.vmem [shape: f32[2,1,32], index: 7, kind: input, shape index: {}]   ;;  %s2630_s8 = inlined_call_operand.vmem [shape: f32[2,1,32], index: 8, kind: input, shape index: {}]   ;;  %s2631_s9 = inlined_call_operand.vmem [shape: f32[2,1,32], index: 9, kind: input, shape index: {}]   ;;  %s2632_s10 = inlined_call_operand.vmem [shape: f32[2,32,64], index: 10, kind: input, shape index: {}]   ;;  %s2633_s11 = inlined_call_operand.vmem [shape: f32[2,1,64], index: 11, kind: input, shape index: {}]   ;;  %s2634_s12 = inlined_call_operand.vmem [shape: f32[2,64,32], index: 12, kind: input, shape index: {}]   ;;  %s2635_s13 = inlined_call_operand.vmem [shape: f32[2,1,32], index: 13, kind: input, shape index: {}]   ;;  %s2636_s14 = inlined_call_operand.vmem [shape: f32[1,32], index: 14, kind: input, shape index: {}]   ;;  %s2637_s15 = inlined_call_operand.vmem [shape: f32[1,32], index: 15, kind: input, shape index: {}]   ;;  %s2638_s16 = inlined_call_operand.hbm [shape: f32[16,32], index: 16, kind: output, shape index: {}]  }
   0x1   :  { %2645 = sst [smem:[#allocation5_spill]] %s2622_s0 }
   0x2   :  { %s2646_s23 = sld [smem:[#allocation5_spill]]  ;;  %vm60_vm0 = vcmask 261120  }
   0x8   :  { %v2142_v0 = vld [vmem:[%s2646_s23 + $0x8] sm:$0xff]  ;;  %v2149_v2 = vld [vmem:[%s2646_s23] sm:$0xff] }
   0x9   :  { %v64_v1 = vsel %vm60_vm0, %v2142_v0, 0.0  ;;  %v61_v3 = vsel %vm60_vm0, %v2149_v2, 0.0 }
   0xa   :  { %65 = vadd.xlane.f32.xlu0 %v64_v1 }
   0xb   :  { %21 = vsyncpa [#allocation3], 0  ;;  %v2039_v4 = vmov 32.0   ;;  %v131_v21 = vld [vmem:[%s2626_s4 + $0x18] sm:$0xff]  ;;  %v130_v22 = vld [vmem:[%s2626_s4 + $0x10] sm:$0xff]  ;;  %s2040_s25 = smov 96  }
   0xc   :  { %1905 = vrcp.f32 %v2039_v4  ;;  %1826 = vmatpush.msra.mxu1 %v131_v21  ;;  %154 = vmatpush.msra.mxu0 %v131_v21  ;;  %v129_v23 = vld [vmem:[%s2626_s4 + $0x8] sm:$0xff]  ;;  %v128_v24 = vld [vmem:[%s2626_s4] sm:$0xff]  ;;  %vm171_vm6 = vcmask 64512   ;;  %vm207_vm7 = vcmask 130048   ;;  %s2041_s30 = smov 64   ;;  %s2042_s0 = smov 88  }
   0xd   :  { %v1887_v46 = vld [vmem:[%s2624_s2] ss:$0 sm:$0xff]  ;;  %s2043_s17 = smov 120   ;;  %s2044_s18 = smov 72   ;;  %vm809_vm12 = vcmask 523264  }
   0xe   :  { %1827 = vmatpush.msra.mxu1 %v130_v22  ;;  %155 = vmatpush.msra.mxu0 %v130_v22  ;;  %v1888_v51 = vld [vmem:[%s2625_s3] ss:$0 sm:$0xff]  ;;  %s2643_s19 = smov 104   ;;  %s2046_s22 = smov 80  }
   0xf   :  { %v1889_v61 = vld [vmem:[%s2627_s5] ss:$0 sm:$0xff]  ;;  %s2047_s23 = smov 112   ;;  %s2642_s24 = smov 56  }
  0x10   :  { %1828 = vmatpush.msra.mxu1 %v129_v23  ;;  %156 = vmatpush.msra.mxu0 %v129_v23  ;;  %v265_v21 = vld [vmem:[%s2628_s6] sm:$0xff]  ;;  %s2641_s26 = smov 48   ;;  %s2640_s27 = smov 40  }
  0x12   :  { %62 = vadd.xlane.f32.xlu0 %v61_v3  ;;  %v1906_v5 = vpop.eup %1905  ;;  %1829 = vmatpush.msra.mxu1 %v128_v24 }
  0x13   :  { %v68_v6 = vmul.f32 32.0, %v1906_v5  ;;  %vm72_vm1 = vweird.f32 %v1906_v5  ;;  %157 = vmatpush.msra.mxu0 %v128_v24 }
  0x15   :  { %v69_v7 = vsub.f32 1.0, %v68_v6 }
  0x17   :  { %v70_v8 = vmul.f32 %v1906_v5, %v69_v7  ;;  %v2201_v7 = vld [vmem:[%s2623_s1] sm:$0xff] }
  0x19   :  { %v71_v9 = vadd.f32 %v1906_v5, %v70_v8 }
  0x1b   :  { %v2153_v10 = vsel %vm72_vm1, %v1906_v5, %v71_v9 }
  0x7d   :  { %v66_v11 = vpop.xlane.xlu0 %65 }
  0x7e   :  { %v75_v12 = vmul.f32 %v2153_v10, %v66_v11 }
  0x80   :  { %v77_v13 = vsub.f32 %v2142_v0, %v75_v12 }
  0x82   :  { %v79_v14 = vmul.f32 %v77_v13, %v77_v13  ;;  %v120_v50 = vmul.f32 %v1887_v46, %v77_v13  ;;  %v2208_v13 = vld [vmem:[%s2623_s1 + $0x8] sm:$0xff] }
  0x84   :  { %v83_v15 = vsel %vm60_vm0, %v79_v14, 0.0 }
  0x85   :  { %84 = vadd.xlane.f32.xlu1 %v83_v15  ;;  %v63_v16 = vpop.xlane.xlu0 %62 }
  0x86   :  { %v74_v17 = vmul.f32 %v2153_v10, %v63_v16 }
  0x88   :  { %v76_v18 = vsub.f32 %v2149_v2, %v74_v17 }
  0x8a   :  { %v78_v19 = vmul.f32 %v76_v18, %v76_v18  ;;  %v119_v57 = vmul.f32 %v1887_v46, %v76_v18 }
  0x8c   :  { %v80_v20 = vsel %vm60_vm0, %v78_v19, 0.0 }
  0x8d   :  { %81 = vadd.xlane.f32.xlu1 %v80_v20 }
  0xf8   :  { %v85_v25 = vpop.xlane.xlu1 %84 }
  0xf9   :  { %v87_v26 = vmul.f32 0.032258064, %v85_v25 }
  0xfb   :  { %1907 = vrsqrt.f32 %v87_v26  ;;  %vm107_vm2 = vcmp.eq.f32.partialorder %v87_v26, inf  ;;  %v110_v39 = vand.u32 2147483648, %v87_v26  ;;  %vm109_vm3 = vcmp.eq.f32.partialorder %v87_v26, 0.0 }
 0x100   :  { %v82_v27 = vpop.xlane.xlu1 %81 }
 0x101   :  { %v1908_v28 = vpop.eup %1907  ;;  %v86_v29 = vmul.f32 0.032258064, %v82_v27 }
 0x102   :  { %v101_v30 = vmul.f32 %v1908_v28, %v87_v26 }
 0x103   :  { %1909 = vrsqrt.f32 %v86_v29  ;;  %vm95_vm4 = vcmp.eq.f32.partialorder %v86_v29, inf  ;;  %v98_v48 = vand.u32 2147483648, %v86_v29  ;;  %vm97_vm5 = vcmp.eq.f32.partialorder %v86_v29, 0.0 }
 0x104   :  { %v102_v31 = vmul.f32 %v1908_v28, %v101_v30 }
 0x106   :  { %v103_v32 = vmul.f32 0.5, %v102_v31 }
 0x108   :  { %v104_v33 = vsub.f32 1.5, %v103_v32 }
 0x109   :  { %v1910_v34 = vpop.eup %1909 }
 0x10a   :  { %v89_v35 = vmul.f32 %v1910_v34, %v86_v29  ;;  %v105_v36 = vmul.f32 %v1908_v28, %v104_v33 }
 0x10c   :  { %v106_v37 = vmul.f32 %v105_v36, %v87_v26  ;;  %v90_v38 = vmul.f32 %v1910_v34, %v89_v35 }
 0x10e   :  { %v108_v40 = vsel %vm107_vm2, %v87_v26, %v106_v37  ;;  %v91_v41 = vmul.f32 0.5, %v90_v38 }
 0x10f   :  { %v111_v42 = vsel %vm109_vm3, %v110_v39, %v108_v40 }
 0x110   :  { %v113_v43 = vadd.f32 1e-06, %v111_v42  ;;  %v92_v44 = vsub.f32 1.5, %v91_v41 }
 0x112   :  { %1911 = vrcp.f32 %v113_v43  ;;  %v93_v45 = vmul.f32 %v1910_v34, %v92_v44 }
 0x114   :  { %v94_v47 = vmul.f32 %v93_v45, %v86_v29 }
 0x116   :  { %v96_v49 = vsel %vm95_vm4, %v86_v29, %v94_v47 }
 0x117   :  { %v99_v52 = vsel %vm97_vm5, %v98_v48, %v96_v49 }
 0x118   :  { %v1912_v53 = vpop.eup %1911  ;;  %v112_v54 = vadd.f32 1e-06, %v99_v52 }
 0x119   :  { %v122_v55 = vmul.f32 %v1912_v53, %v120_v50 }
 0x11a   :  { %1913 = vrcp.f32 %v112_v54 }
 0x11b   :  { %v127_v56 = vadd.f32 %v1888_v51, %v122_v55 }
 0x11d   :  { %1720 = vmatmul.msk.f32.vlgmr.msra.gmra.mxu1 %vm60_vm0, %v127_v56 }
 0x120   :  { %v1914_v58 = vpop.eup %1913 }
 0x121   :  { %v121_v59 = vmul.f32 %v1914_v58, %v119_v57 }
 0x123   :  { %v126_v60 = vadd.f32 %v1888_v51, %v121_v59 }
 0x125   :  { %1719 = vmatmul.msk.f32.vlgmr.msra.gmra.mxu0 %vm60_vm0, %v126_v60 }
 0x19a   :  { %v162_v62 = vpop.f32.mrf.mxu1 }
 0x19b   :  { %v2184_v63 = vadd.f32 %v1889_v61, %v162_v62 }
 0x19d   :  { %169 = vrot.lane.b32.xlu2 %v2184_v63, %s2040_s25 }
 0x1a2   :  { %v159_v1 = vpop.f32.mrf.mxu0 }
 0x1a3   :  { %v2188_v3 = vadd.f32 %v1889_v61, %v159_v1 }
 0x1a5   :  { %167 = vrot.lane.b32.xlu2 %v2188_v3, %s2040_s25  ;;  %v2214_v17 = vpack.i.bf16 %v2188_v3, %v2184_v63 }
 0x1f7   :  { %v170_v4 = vpop.permute.xlu2 %169 }
 0x1f8   :  { %1721 = vmatpush.xpose.msk.msrb.mxu1 %vm171_vm6, %v170_v4 }
 0x1ff   :  { %v168_v5 = vpop.permute.xlu2 %167 }
 0x200   :  { %1722 = vmatpush.xpose.msk.msrb.mxu1 %vm171_vm6, %v168_v5 }
 0x203   :  { %1723 = vmatmul.msk.f32.vlgmr.msrb.gmra.mxu1 %vm171_vm6, %v2188_v3 }
 0x204   :  { %418 = vmatpush.msra.mxu1 %v265_v21 }
 0x20b   :  { %1724 = vmatmul.msk.f32.gmra.mxu1 %vm171_vm6, %v2184_v63 }
 0x280   :  { %v197_v6 = vpop.f32.mrf.mxu1 }
 0x281   :  { %v203_v8 = vmul.f32 0.35355338, %v197_v6 }
 0x283   :  { %v205_v9 = vadd.f32 %v203_v8, %v2201_v7 }
 0x285   :  { %v208_v11 = vsel %vm207_vm7, %v205_v9, -inf }
 0x286   :  { %209 = vmax.xlane.f32.xlu0 %v208_v11 }
 0x288   :  { %v200_v12 = vpop.f32.mrf.mxu1 }
 0x289   :  { %v204_v14 = vmul.f32 0.35355338, %v200_v12 }
 0x28b   :  { %v206_v15 = vadd.f32 %v204_v14, %v2208_v13 }
 0x28d   :  { %v211_v16 = vsel %vm207_vm7, %v206_v15, -inf }
 0x28e   :  { %212 = vmax.xlane.f32.xlu1 %v211_v16 }
 0x29a   :  { %1848 = vrot.lane.b32.xlu0 %v2214_v17, %s2041_s30 }
 0x2a2   :  { %270 = vrot.lane.b32.xlu0 %v2188_v3, %s2042_s0 }
 0x2aa   :  { %266 = vrot.lane.b32.xlu0 %v2188_v3, %s2043_s17 }
 0x2b2   :  { %565 = vrot.lane.b32.xlu0 %v2184_v63, %s2044_s18 }
 0x2ba   :  { %563 = vrot.lane.b32.xlu0 %v2188_v3, %s2044_s18 }
 0x2c2   :  { %559 = vrot.lane.b32.xlu0 %v2188_v3, %s2643_s19 }
 0x2f9   :  { %v210_v18 = vpop.xlane.xlu0 %209 }
 0x2fa   :  { %v214_v19 = vsub.f32 %v205_v9, %v210_v18 }
 0x2fc   :  { %v216_v20 = vmul.f32 1.442695, %v214_v19 }
 0x2fe   :  { %1915 = vpow2.f32 %v216_v20 }
 0x301   :  { %v213_v22 = vpop.xlane.xlu1 %212 }
 0x302   :  { %v215_v23 = vsub.f32 %v206_v15, %v213_v22 }
 0x304   :  { %v1916_v24 = vpop.eup %1915  ;;  %v218_v25 = vmul.f32 1.442695, %v215_v23 }
 0x305   :  { %v220_v26 = vsel %vm207_vm7, %v1916_v24, 0.0 }
 0x306   :  { %1917 = vpow2.f32 %v218_v25  ;;  %221 = vadd.xlane.f32.xlu2 %v220_v26 }
 0x30c   :  { %v1918_v27 = vpop.eup %1917  ;;  %v1849_v28 = vpop.permute.xlu0 %1848 }
 0x30d   :  { %v223_v29 = vsel %vm207_vm7, %v1918_v27, 0.0  ;;  %v1850_v30 = vunpack.i.l.bf16 %v1849_v28  ;;  %v1851_v31 = vunpack.i.h.bf16 %v1849_v28 }
 0x30e   :  { %224 = vadd.xlane.f32.xlu1 %v223_v29 }
 0x30f   :  { %256 = vmatpush.msra.mxu2 %v1850_v30  ;;  %1830 = vmatpush.msra.mxu3 %v1850_v30 }
 0x311   :  { %257 = vmatpush.msra.mxu2 %v1851_v31  ;;  %1831 = vmatpush.msra.mxu3 %v1851_v31 }
 0x314   :  { %v271_v32 = vpop.permute.xlu0 %270 }
 0x31c   :  { %v267_v33 = vpop.permute.xlu0 %266 }
 0x31e   :  { %432 = vrot.lane.b32.xlu2 %v2184_v63, %s2046_s22 }
 0x324   :  { %v566_v34 = vpop.permute.xlu0 %565 }
 0x325   :  { %1747 = vmatpush.xpose.msk.msrb.mxu1 %vm171_vm6, %v566_v34 }
 0x326   :  { %561 = vrot.lane.b32.xlu2 %v2184_v63, %s2643_s19 }
 0x327   :  { %272 = vrot.lane.b32.xlu1 %v2184_v63, %s2042_s0 }
 0x32c   :  { %v564_v35 = vpop.permute.xlu0 %563 }
 0x32d   :  { %1748 = vmatpush.xpose.msk.msrb.mxu1 %vm171_vm6, %v564_v35 }
 0x32f   :  { %268 = vrot.lane.b32.xlu1 %v2184_v63, %s2043_s17 }
 0x334   :  { %v560_v50 = vpop.permute.xlu0 %559 }
 0x337   :  { %430 = vrot.lane.b32.xlu1 %v2188_v3, %s2046_s22 }
 0x33f   :  { %426 = vrot.lane.b32.xlu1 %v2188_v3, %s2047_s23 }
 0x347   :  { %428 = vrot.lane.b32.xlu1 %v2184_v63, %s2047_s23 }
 0x379   :  { %v222_v36 = vpop.xlane.xlu2 %221 }
 0x37a   :  { %1919 = vrcp.f32 %v222_v36 }
 0x380   :  { %v1920_v37 = vpop.eup %1919 }
 0x381   :  { %v225_v38 = vpop.xlane.xlu1 %224  ;;  %v228_v39 = vmul.f32 %v1920_v37, %v1916_v24  ;;  %v433_v43 = vpop.permute.xlu2 %432 }
 0x382   :  { %1921 = vrcp.f32 %v225_v38 }
 0x383   :  { %1725 = vmatmul.msk.f32.vlgmr.msra.gmra.mxu2 %vm207_vm7, %v228_v39 }
 0x388   :  { %v1922_v40 = vpop.eup %1921 }
 0x389   :  { %v229_v41 = vmul.f32 %v1922_v40, %v1918_v27  ;;  %v562_v51 = vpop.permute.xlu2 %561 }
 0x38b   :  { %1726 = vmatmul.msk.f32.vlgmr.msra.gmra.mxu3 %vm207_vm7, %v229_v41 }
 0x399   :  { %v273_v42 = vpop.permute.xlu1 %272 }
 0x39a   :  { %1727 = vmatpush.xpose.msk.msrb.mxu3 %vm171_vm6, %v273_v42 }
 0x39e   :  { %1728 = vmatpush.xpose.msk.msrb.mxu3 %vm171_vm6, %v271_v32 }
 0x3a1   :  { %1729 = vmatmul.msk.f32.vlgmr.msrb.gmra.mxu3 %vm171_vm6, %v267_v33  ;;  %v269_v44 = vpop.permute.xlu1 %268 }
 0x3a2   :  { %1738 = vmatpush.xpose.msk.msra.mxu3 %vm171_vm6, %v433_v43 }
 0x3a9   :  { %1730 = vmatmul.msk.f32.gmra.mxu3 %vm171_vm6, %v269_v44  ;;  %v431_v45 = vpop.permute.xlu1 %430 }
 0x3aa   :  { %1739 = vmatpush.xpose.msk.msra.mxu3 %vm171_vm6, %v431_v45 }
 0x3b1   :  { %v427_v46 = vpop.permute.xlu1 %426 }
 0x3b2   :  { %1740 = vmatmul.msk.f32.vlgmr.msra.gmra.mxu3 %vm171_vm6, %v427_v46 }
 0x3b9   :  { %v429_v47 = vpop.permute.xlu1 %428 }
 0x3ba   :  { %1741 = vmatmul.msk.f32.gmra.mxu3 %vm171_vm6, %v429_v47 }
 0x406   :  { %v259_v48 = vpop.f32.mrf.mxu2 }
 0x407   :  { %1736 = vmatmul.msk.f32.vlgmr.msra.gmra.mxu1 %vm171_vm6, %v259_v48 }
 0x40e   :  { %v262_v49 = vpop.f32.mrf.mxu3 }
 0x40f   :  { %1737 = vmatmul.msk.f32.gmra.mxu1 %vm171_vm6, %v262_v49 }
 0x417   :  { %1749 = vmatmul.msk.f32.vlgmr.msrb.gmra.mxu1 %vm171_vm6, %v560_v50 }
 0x41f   :  { %1750 = vmatmul.msk.f32.gmra.mxu1 %vm171_vm6, %v562_v51 }
 0x424   :  { %v299_v52 = vpop.f32.mrf.mxu3 }
 0x425   :  { %v305_v53 = vmul.f32 0.35355338, %v299_v52 }
 0x427   :  { %v307_v54 = vadd.f32 %v305_v53, %v2201_v7 }
 0x429   :  { %v309_v55 = vsel %vm207_vm7, %v307_v54, -inf }
 0x42a   :  { %310 = vmax.xlane.f32.xlu0 %v309_v55 }
 0x42c   :  { %v302_v56 = vpop.f32.mrf.mxu3 }
 0x42d   :  { %v306_v57 = vmul.f32 0.35355338, %v302_v56 }
 0x42f   :  { %v308_v58 = vadd.f32 %v306_v57, %v2208_v13 }
 0x431   :  { %v312_v59 = vsel %vm207_vm7, %v308_v58, -inf }
 0x432   :  { %313 = vmax.xlane.f32.xlu1 %v312_v59 }
 0x435   :  { %v459_v60 = vpop.f32.mrf.mxu3 }
 0x436   :  { %v465_v61 = vmul.f32 0.35355338, %v459_v60 }
 0x438   :  { %v467_v62 = vadd.f32 %v465_v61, %v2201_v7 }
 0x43a   :  { %v469_v63 = vsel %vm207_vm7, %v467_v62, -inf }
 0x43b   :  { %470 = vmax.xlane.f32.xlu0 %v469_v63 }
 0x43d   :  { %v462_v1 = vpop.f32.mrf.mxu3 }
 0x43e   :  { %v466_v3 = vmul.f32 0.35355338, %v462_v1 }
 0x440   :  { %v468_v4 = vadd.f32 %v466_v3, %v2208_v13  ;;  %v1733_v3 = vld [vmem:[%s2628_s6 + $0x8] sm:$0xff] }
 0x441   :  { %389 = vmatpush.msrb.mxu0 %v1733_v3  ;;  %v808_v3 = vld [vmem:[%s2634_s12 + $0x38] sm:$0xff] }
 0x442   :  { %v472_v5 = vsel %vm207_vm7, %v468_v4, -inf  ;;  %824 = vmatpush.msra.mxu1 %v808_v3 }
 0x443   :  { %473 = vmax.xlane.f32.xlu1 %v472_v5 }
 0x484   :  { %v2271_v6 = vpop.f32.mrf.mxu1 }
 0x48c   :  { %v2273_v8 = vpop.f32.mrf.mxu1 }
 0x494   :  { %v592_v9 = vpop.f32.mrf.mxu1 }
 0x495   :  { %v598_v11 = vmul.f32 0.35355338, %v592_v9  ;;  %v1744_v9 = vld [vmem:[%s2628_s6 + $0x10] sm:$0xff] }
 0x496   :  { %549 = vmatpush.msra.mxu0 %v1744_v9  ;;  %v806_v9 = vld [vmem:[%s2634_s12 + $0x28] sm:$0xff] }
 0x497   :  { %v600_v12 = vadd.f32 %v598_v11, %v2201_v7 }
 0x499   :  { %v602_v14 = vsel %vm207_vm7, %v600_v12, -inf }
 0x49a   :  { %603 = vmax.xlane.f32.xlu2 %v602_v14 }
 0x49c   :  { %v595_v15 = vpop.f32.mrf.mxu1 }
 0x49d   :  { %v599_v16 = vmul.f32 0.35355338, %v595_v15  ;;  %v311_v18 = vpop.xlane.xlu0 %310 }
 0x49e   :  { %v315_v19 = vsub.f32 %v307_v54, %v311_v18 }
 0x49f   :  { %v601_v20 = vadd.f32 %v599_v16, %v2208_v13 }
 0x4a0   :  { %v317_v21 = vmul.f32 1.442695, %v315_v19 }
 0x4a1   :  { %v605_v22 = vsel %vm207_vm7, %v601_v20, -inf }
 0x4a2   :  { %1923 = vpow2.f32 %v317_v21  ;;  %606 = vmax.xlane.f32.xlu2 %v605_v22 }
 0x4a5   :  { %v314_v23 = vpop.xlane.xlu1 %313 }
 0x4a6   :  { %v316_v24 = vsub.f32 %v308_v58, %v314_v23 }
 0x4a8   :  { %v1924_v25 = vpop.eup %1923  ;;  %v319_v26 = vmul.f32 1.442695, %v316_v24 }
 0x4a9   :  { %v321_v27 = vsel %vm207_vm7, %v1924_v25, 0.0 }
 0x4aa   :  { %1925 = vpow2.f32 %v319_v26  ;;  %322 = vadd.xlane.f32.xlu0 %v321_v27 }
 0x4ae   :  { %v471_v28 = vpop.xlane.xlu0 %470 }
 0x4af   :  { %v475_v29 = vsub.f32 %v467_v62, %v471_v28 }
 0x4b0   :  { %v1926_v30 = vpop.eup %1925 }
 0x4b1   :  { %v477_v31 = vmul.f32 1.442695, %v475_v29  ;;  %v324_v32 = vsel %vm207_vm7, %v1926_v30, 0.0 }
 0x4b2   :  { %325 = vadd.xlane.f32.xlu1 %v324_v32 }
 0x4b3   :  { %1927 = vpow2.f32 %v477_v31 }
 0x4b6   :  { %v474_v38 = vpop.xlane.xlu1 %473 }
 0x4b7   :  { %v476_v42 = vsub.f32 %v468_v4, %v474_v38 }
 0x4b9   :  { %v1928_v33 = vpop.eup %1927  ;;  %v479_v45 = vmul.f32 1.442695, %v476_v42 }
 0x4ba   :  { %1853 = vrot.lane.b32.xlu2 %v2214_v17, %s2642_s24  ;;  %v481_v34 = vsel %vm207_vm7, %v1928_v33, 0.0 }
 0x4bb   :  { %482 = vadd.xlane.f32.xlu1 %v481_v34 }
 0x4c2   :  { %1863 = vrot.lane.b32.xlu2 %v2214_v17, %s2641_s26 }
 0x50d   :  { %v604_v35 = vpop.xlane.xlu2 %603 }
 0x50e   :  { %v608_v36 = vsub.f32 %v600_v12, %v604_v35 }
 0x510   :  { %v610_v37 = vmul.f32 1.442695, %v608_v36  ;;  %v1890_v36 = vld [vmem:[%s2629_s7] ss:$0 sm:$0xff] }
 0x512   :  { %1929 = vpow2.f32 %v610_v37 }
 0x515   :  { %v607_v39 = vpop.xlane.xlu2 %606 }
 0x516   :  { %v609_v40 = vsub.f32 %v601_v20, %v607_v39 }
 0x518   :  { %v1930_v41 = vpop.eup %1929  ;;  %v612_v43 = vmul.f32 1.442695, %v609_v40 }
 0x519   :  { %v614_v44 = vsel %vm207_vm7, %v1930_v41, 0.0 }
 0x51a   :  { %1931 = vpow2.f32 %v612_v43  ;;  %615 = vadd.xlane.f32.xlu0 %v614_v44 }
 0x51d   :  { %v1854_v46 = vpop.permute.xlu2 %1853  ;;  %v323_v47 = vpop.xlane.xlu0 %322 }
 0x51e   :  { %1933 = vrcp.f32 %v323_v47  ;;  %v1855_v48 = vunpack.i.l.bf16 %v1854_v46  ;;  %v1856_v50 = vunpack.i.h.bf16 %v1854_v46 }
 0x51f   :  { %1935 = vpow2.f32 %v479_v45 }
 0x520   :  { %v1932_v49 = vpop.eup %1931  ;;  %357 = vmatpush.msrb.mxu2 %v1855_v48 }
 0x521   :  { %v617_v51 = vsel %vm207_vm7, %v1932_v49, 0.0 }
 0x522   :  { %358 = vmatpush.msrb.mxu2 %v1856_v50  ;;  %618 = vadd.xlane.f32.xlu1 %v617_v51 }
 0x524   :  { %v1934_v52 = vpop.eup %1933 }
 0x525   :  { %v1864_v53 = vpop.permute.xlu2 %1863  ;;  %v326_v54 = vpop.xlane.xlu1 %325  ;;  %v329_v55 = vmul.f32 %v1934_v52, %v1924_v25 }
 0x526   :  { %v1936_v56 = vpop.eup %1935  ;;  %v1865_v57 = vunpack.i.l.bf16 %v1864_v53  ;;  %1937 = vrcp.f32 %v326_v54  ;;  %v1866_v58 = vunpack.i.h.bf16 %v1864_v53  ;;  %v765_v54 = vld [vmem:[%s2632_s10 + $0x18] sm:$0xff] }
 0x527   :  { %1731 = vmatmul.msk.f32.vlgmr.msrb.gmra.mxu2 %vm207_vm7, %v329_v55  ;;  %v484_v59 = vsel %vm207_vm7, %v1936_v56, 0.0  ;;  %v764_v55 = vld [vmem:[%s2632_s10 + $0x10] sm:$0xff] }
 0x528   :  { %517 = vmatpush.msra.mxu2 %v1865_v57  ;;  %v762_v57 = vld [vmem:[%s2632_s10] sm:$0xff] }
 0x52a   :  { %518 = vmatpush.msra.mxu2 %v1866_v58  ;;  %485 = vadd.xlane.f32.xlu1 %v484_v59 }
 0x52c   :  { %v1938_v60 = vpop.eup %1937 }
 0x52d   :  { %v330_v61 = vmul.f32 %v1938_v60, %v1926_v30 }
 0x52e   :  { %1858 = vrot.lane.b32.xlu0 %v2214_v17, %s2640_s27  ;;  %v483_v62 = vpop.xlane.xlu1 %482  ;;  %v1753_v17 = vld [vmem:[%s2628_s6 + $0x18] sm:$0xff] }
 0x52f   :  { %1939 = vrcp.f32 %v483_v62  ;;  %1732 = vmatmul.msk.f32.gmra.mxu2 %vm207_vm7, %v330_v61 }
 0x530   :  { %682 = vmatpush.msrb.mxu2 %v1753_v17 }
 0x535   :  { %v1940_v63 = vpop.eup %1939 }
 0x536   :  { %v489_v1 = vmul.f32 %v1940_v63, %v1928_v33 }
 0x538   :  { %1742 = vmatmul.msk.f32.vlgmr.msra.gmra.mxu2 %vm207_vm7, %v489_v1 }
 0x58d   :  { %v616_v5 = vpop.xlane.xlu0 %615 }
 0x58e   :  { %1941 = vrcp.f32 %v616_v5 }
 0x594   :  { %v1942_v14 = vpop.eup %1941 }
 0x595   :  { %v619_v4 = vpop.xlane.xlu1 %618  ;;  %v622_v19 = vmul.f32 %v1942_v14, %v1930_v41 }
 0x59d   :  { %v486_v11 = vpop.xlane.xlu1 %485 }
 0x59e   :  { %1943 = vrcp.f32 %v486_v11 }
 0x59f   :  { %1945 = vrcp.f32 %v619_v4  ;;  %v807_v4 = vld [vmem:[%s2634_s12 + $0x30] sm:$0xff] }
 0x5a0   :  { %v1859_v12 = vpop.permute.xlu0 %1858  ;;  %825 = vmatpush.msra.mxu1 %v807_v4 }
 0x5a1   :  { %v1860_v15 = vunpack.i.l.bf16 %v1859_v12  ;;  %v1861_v16 = vunpack.i.h.bf16 %v1859_v12  ;;  %v805_v12 = vld [vmem:[%s2634_s12 + $0x20] sm:$0xff] }
 0x5a2   :  { %826 = vmatpush.msra.mxu1 %v806_v9  ;;  %v1764_v9 = vld [vmem:[%s2626_s4 + $0x30] sm:$0xff] }
 0x5a3   :  { %650 = vmatpush.msrb.mxu3 %v1860_v15 }
 0x5a4   :  { %v1944_v18 = vpop.eup %1943  ;;  %827 = vmatpush.msra.mxu1 %v805_v12 }
 0x5a5   :  { %651 = vmatpush.msrb.mxu3 %v1861_v16  ;;  %v490_v20 = vmul.f32 %v1944_v18, %v1936_v56  ;;  %v1946_v21 = vpop.eup %1945  ;;  %v763_v56 = vld [vmem:[%s2632_s10 + $0x8] sm:$0xff]  ;;  %v804_v16 = vld [vmem:[%s2634_s12 + $0x18] sm:$0xff] }
 0x5a6   :  { %1751 = vmatmul.msk.f32.vlgmr.msrb.gmra.mxu3 %vm207_vm7, %v622_v19  ;;  %v623_v23 = vmul.f32 %v1946_v21, %v1932_v49  ;;  %828 = vmatpush.msra.mxu1 %v804_v16 }
 0x5a7   :  { %1743 = vmatmul.msk.f32.gmra.mxu2 %vm207_vm7, %v490_v20 }
 0x5aa   :  { %v360_v22 = vpop.f32.mrf.mxu2 }
 0x5ab   :  { %1734 = vmatmul.msk.f32.vlgmr.msrb.gmra.mxu0 %vm171_vm6, %v360_v22 }
 0x5ac   :  { %788 = vmatpush.msrb.mxu0 %v765_v54 }
 0x5ae   :  { %1752 = vmatmul.msk.f32.gmra.mxu3 %vm207_vm7, %v623_v23  ;;  %789 = vmatpush.msrb.mxu0 %v764_v55 }
 0x5b0   :  { %790 = vmatpush.msrb.mxu0 %v763_v56 }
 0x5b2   :  { %v363_v24 = vpop.f32.mrf.mxu2  ;;  %791 = vmatpush.msrb.mxu0 %v762_v57 }
 0x5b3   :  { %1735 = vmatmul.msk.f32.gmra.mxu0 %vm171_vm6, %v363_v24 }
 0x5bb   :  { %v520_v25 = vpop.f32.mrf.mxu2 }
 0x5bc   :  { %1745 = vmatmul.msk.f32.vlgmr.msra.gmra.mxu0 %vm171_vm6, %v520_v25 }
 0x628   :  { %v391_v29 = vpop.f32.mrf.mxu0 }
 0x629   :  { %v653_v26 = vpop.f32.mrf.mxu3  ;;  %v421_v32 = vadd.f32 %v2271_v6, %v391_v29 }
 0x62a   :  { %v523_v27 = vpop.f32.mrf.mxu2  ;;  %1754 = vmatmul.msk.f32.vlgmr.msrb.gmra.mxu2 %vm171_vm6, %v653_v26 }
 0x62b   :  { %1746 = vmatmul.msk.f32.gmra.mxu0 %vm171_vm6, %v523_v27  ;;  %v1891_v27 = vld [vmem:[%s2630_s8] ss:$0 sm:$0xff] }
 0x630   :  { %v394_v30 = vpop.f32.mrf.mxu0 }
 0x631   :  { %v656_v28 = vpop.f32.mrf.mxu3  ;;  %v424_v39 = vadd.f32 %v2273_v8, %v394_v30 }
 0x632   :  { %1755 = vmatmul.msk.f32.gmra.mxu2 %vm171_vm6, %v656_v28 }
 0x639   :  { %v551_v31 = vpop.f32.mrf.mxu0 }
 0x63a   :  { %v557_v33 = vadd.f32 %v551_v31, %v421_v32  ;;  %v1892_v32 = vld [vmem:[%s2631_s9] ss:$0 sm:$0xff] }
 0x6a8   :  { %v554_v38 = vpop.f32.mrf.mxu0 }
 0x6a9   :  { %v558_v41 = vadd.f32 %v554_v38, %v424_v39 }
 0x6ad   :  { %v684_v34 = vpop.f32.mrf.mxu2 }
 0x6ae   :  { %v690_v35 = vadd.f32 %v684_v34, %v557_v33 }
 0x6b0   :  { %v692_v37 = vadd.f32 %v690_v35, %v2149_v2 }
 0x6b2   :  { %v2318_v40 = vadd.f32 %v1890_v36, %v692_v37 }
 0x6b4   :  { %v702_v42 = vsel %vm60_vm0, %v2318_v40, 0.0 }
 0x6b5   :  { %703 = vadd.xlane.f32.xlu0 %v702_v42  ;;  %v687_v6 = vpop.f32.mrf.mxu2 }
 0x6b6   :  { %v691_v43 = vadd.f32 %v687_v6, %v558_v41  ;;  %v803_v6 = vld [vmem:[%s2634_s12 + $0x10] sm:$0xff] }
 0x6b7   :  { %829 = vmatpush.msra.mxu1 %v803_v6 }
 0x6b8   :  { %v693_v44 = vadd.f32 %v691_v43, %v2142_v0  ;;  %v802_v43 = vld [vmem:[%s2634_s12 + $0x8] sm:$0xff] }
 0x6b9   :  { %830 = vmatpush.msra.mxu1 %v802_v43 }
 0x6ba   :  { %v2323_v45 = vadd.f32 %v1890_v36, %v693_v44  ;;  %v801_v44 = vld [vmem:[%s2634_s12] sm:$0xff] }
 0x6bb   :  { %831 = vmatpush.msra.mxu1 %v801_v44 }
 0x6bc   :  { %v705_v46 = vsel %vm60_vm0, %v2323_v45, 0.0 }
 0x6bd   :  { %706 = vadd.xlane.f32.xlu2 %v705_v46  ;;  %v1893_v46 = vld [vmem:[%s2633_s11] ss:$0 sm:$0xff] }
 0x728   :  { %v704_v2 = vpop.xlane.xlu0 %703 }
 0x729   :  { %v708_v8 = vmul.f32 %v704_v2, %v2153_v10 }
 0x72b   :  { %v710_v47 = vsub.f32 %v2318_v40, %v708_v8 }
 0x72d   :  { %v712_v48 = vmul.f32 %v710_v47, %v710_v47  ;;  %v753_v31 = vmul.f32 %v1891_v27, %v710_v47 }
 0x72f   :  { %v714_v49 = vsel %vm60_vm0, %v712_v48, 0.0 }
 0x730   :  { %715 = vadd.xlane.f32.xlu1 %v714_v49  ;;  %v707_v50 = vpop.xlane.xlu2 %706 }
 0x731   :  { %v709_v51 = vmul.f32 %v707_v50, %v2153_v10 }
 0x733   :  { %v2332_v0 = vsub.f32 %v2323_v45, %v709_v51  ;;  %v1894_v51 = vld [vmem:[%s2635_s13] ss:$0 sm:$0xff] }
 0x735   :  { %v713_v52 = vmul.f32 %v2332_v0, %v2332_v0  ;;  %v754_v38 = vmul.f32 %v1891_v27, %v2332_v0 }
 0x737   :  { %v717_v53 = vsel %vm60_vm0, %v713_v52, 0.0 }
 0x738   :  { %718 = vadd.xlane.f32.xlu1 %v717_v53 }
 0x7a3   :  { %v716_v58 = vpop.xlane.xlu1 %715 }
 0x7a4   :  { %v720_v59 = vmul.f32 0.032258064, %v716_v58 }
 0x7a6   :  { %1947 = vrsqrt.f32 %v720_v59  ;;  %vm729_vm8 = vcmp.eq.f32.partialorder %v720_v59, inf  ;;  %v732_v20 = vand.u32 2147483648, %v720_v59  ;;  %vm731_vm9 = vcmp.eq.f32.partialorder %v720_v59, 0.0 }
 0x7ab   :  { %v719_v60 = vpop.xlane.xlu1 %718 }
 0x7ac   :  { %v1948_v61 = vpop.eup %1947  ;;  %v721_v62 = vmul.f32 0.032258064, %v719_v60 }
 0x7ad   :  { %v723_v63 = vmul.f32 %v1948_v61, %v720_v59 }
 0x7ae   :  { %1949 = vrsqrt.f32 %v721_v62  ;;  %vm741_vm10 = vcmp.eq.f32.partialorder %v721_v62, inf  ;;  %v744_v29 = vand.u32 2147483648, %v721_v62  ;;  %vm743_vm11 = vcmp.eq.f32.partialorder %v721_v62, 0.0 }
 0x7af   :  { %v724_v1 = vmul.f32 %v1948_v61, %v723_v63 }
 0x7b1   :  { %v725_v5 = vmul.f32 0.5, %v724_v1 }
 0x7b3   :  { %v726_v17 = vsub.f32 1.5, %v725_v5  ;;  %v1765_v5 = vld [vmem:[%s2626_s4 + $0x38] sm:$0xff] }
 0x7b4   :  { %v1950_v11 = vpop.eup %1949  ;;  %939 = vmatpush.msra.mxu3 %v1765_v5 }
 0x7b5   :  { %v727_v14 = vmul.f32 %v1948_v61, %v726_v17  ;;  %v735_v15 = vmul.f32 %v1950_v11, %v721_v62  ;;  %v1763_v17 = vld [vmem:[%s2626_s4 + $0x28] sm:$0xff] }
 0x7b6   :  { %940 = vmatpush.msra.mxu3 %v1764_v9 }
 0x7b7   :  { %v728_v18 = vmul.f32 %v727_v14, %v720_v59  ;;  %v736_v19 = vmul.f32 %v1950_v11, %v735_v15 }
 0x7b8   :  { %941 = vmatpush.msra.mxu3 %v1763_v17 }
 0x7b9   :  { %v730_v21 = vsel %vm729_vm8, %v720_v59, %v728_v18  ;;  %v737_v22 = vmul.f32 0.5, %v736_v19 }
 0x7ba   :  { %v733_v23 = vsel %vm731_vm9, %v732_v20, %v730_v21 }
 0x7bb   :  { %v746_v24 = vadd.f32 1e-06, %v733_v23  ;;  %v738_v25 = vsub.f32 1.5, %v737_v22 }
 0x7bd   :  { %1951 = vrcp.f32 %v746_v24  ;;  %v739_v26 = vmul.f32 %v1950_v11, %v738_v25  ;;  %v1762_v11 = vld [vmem:[%s2626_s4 + $0x20] sm:$0xff] }
 0x7be   :  { %942 = vmatpush.msra.mxu3 %v1762_v11 }
 0x7bf   :  { %v740_v28 = vmul.f32 %v739_v26, %v721_v62 }
 0x7c1   :  { %v742_v30 = vsel %vm741_vm10, %v721_v62, %v740_v28 }
 0x7c2   :  { %v745_v33 = vsel %vm743_vm11, %v744_v29, %v742_v30 }
 0x7c3   :  { %v1952_v34 = vpop.eup %1951  ;;  %v747_v35 = vadd.f32 1e-06, %v745_v33 }
 0x7c4   :  { %v755_v36 = vmul.f32 %v1952_v34, %v753_v31 }
 0x7c5   :  { %1953 = vrcp.f32 %v747_v35  ;;  %v1895_v35 = vld [vmem:[%s2624_s2 + $0x1] ss:$0 sm:$0xff] }
 0x7c6   :  { %v760_v37 = vadd.f32 %v1892_v32, %v755_v36 }
 0x7c8   :  { %1756 = vmatmul.msk.f32.vlgmr.msrb.gmra.mxu0 %vm60_vm0, %v760_v37 }
 0x7cb   :  { %v1954_v39 = vpop.eup %1953 }
 0x7cc   :  { %v756_v41 = vmul.f32 %v1954_v39, %v754_v38 }
 0x7ce   :  { %v761_v42 = vadd.f32 %v1892_v32, %v756_v41  ;;  %v1896_v41 = vld [vmem:[%s2625_s3 + $0x1] ss:$0 sm:$0xff]  ;;  %s2647_s3 = smov 104  }
 0x7d0   :  { %1757 = vmatmul.msk.f32.gmra.mxu0 %vm60_vm0, %v761_v42 }
 0x845   :  { %v793_v2 = vpop.f32.mrf.mxu0 }
 0x846   :  { %v794_v8 = vadd.f32 %v1893_v46, %v793_v2 }
 0x848   :  { %v799_v47 = vmax.f32 %v794_v8, 0.0 }
 0x84a   :  { %1758 = vmatmul.msk.f32.vlgmr.msra.gmra.mxu1 %vm809_vm12, %v799_v47 }
 0x84d   :  { %v796_v48 = vpop.f32.mrf.mxu0 }
 0x84e   :  { %v797_v49 = vadd.f32 %v1893_v46, %v796_v48 }
 0x850   :  { %v800_v50 = vmax.f32 %v797_v49, 0.0  ;;  %v1897_v49 = vld [vmem:[%s2627_s5 + $0x1] ss:$0 sm:$0xff] }
 0x852   :  { %1759 = vmatmul.msk.f32.gmra.mxu1 %vm809_vm12, %v800_v50 }
 0x8c7   :  { %v833_v0 = vpop.f32.mrf.mxu1 }
 0x8c8   :  { %v839_v52 = vadd.f32 %v833_v0, %v2318_v40 }
 0x8ca   :  { %v2391_v53 = vadd.f32 %v1894_v51, %v839_v52 }
 0x8cc   :  { %v851_v54 = vsel %vm60_vm0, %v2391_v53, 0.0 }
 0x8cd   :  { %852 = vadd.xlane.f32.xlu1 %v851_v54 }
 0x8cf   :  { %v836_v55 = vpop.f32.mrf.mxu1 }
 0x8d0   :  { %v840_v56 = vadd.f32 %v836_v55, %v2323_v45 }
 0x8d2   :  { %v2396_v57 = vadd.f32 %v1894_v51, %v840_v56 }
 0x8d4   :  { %v854_v58 = vsel %vm60_vm0, %v2396_v57, 0.0 }
 0x8d5   :  { %855 = vadd.xlane.f32.xlu1 %v854_v58 }
 0x940   :  { %v853_v59 = vpop.xlane.xlu1 %852 }
 0x941   :  { %v857_v60 = vmul.f32 %v853_v59, %v2153_v10 }
 0x943   :  { %v859_v40 = vsub.f32 %v2391_v53, %v857_v60 }
 0x945   :  { %v861_v61 = vmul.f32 %v859_v40, %v859_v40  ;;  %v902_v39 = vmul.f32 %v1895_v35, %v859_v40 }
 0x947   :  { %v863_v62 = vsel %vm60_vm0, %v861_v61, 0.0 }
 0x948   :  { %864 = vadd.xlane.f32.xlu1 %v863_v62  ;;  %v856_v63 = vpop.xlane.xlu1 %855 }
 0x949   :  { %v858_v1 = vmul.f32 %v856_v63, %v2153_v10 }
 0x94b   :  { %v860_v45 = vsub.f32 %v2396_v57, %v858_v1 }
 0x94d   :  { %v862_v3 = vmul.f32 %v860_v45, %v860_v45  ;;  %v903_v2 = vmul.f32 %v1895_v35, %v860_v45 }
 0x94f   :  { %v866_v4 = vsel %vm60_vm0, %v862_v3, 0.0 }
 0x950   :  { %867 = vadd.xlane.f32.xlu1 %v866_v4 }
 0x9bb   :  { %v865_v12 = vpop.xlane.xlu1 %864 }
 0x9bc   :  { %v869_v14 = vmul.f32 0.032258064, %v865_v12 }
 0x9be   :  { %1955 = vrsqrt.f32 %v869_v14  ;;  %vm878_vm13 = vcmp.eq.f32.partialorder %v869_v14, inf  ;;  %v881_v28 = vand.u32 2147483648, %v869_v14  ;;  %vm880_vm14 = vcmp.eq.f32.partialorder %v869_v14, 0.0 }
 0x9c3   :  { %v868_v15 = vpop.xlane.xlu1 %867 }
 0x9c4   :  { %v1956_v16 = vpop.eup %1955  ;;  %v870_v18 = vmul.f32 0.032258064, %v868_v15 }
 0x9c5   :  { %v872_v19 = vmul.f32 %v1956_v16, %v869_v14 }
 0x9c6   :  { %1957 = vrsqrt.f32 %v870_v18  ;;  %vm890_vm15 = vcmp.eq.f32.partialorder %v870_v18, inf  ;;  %v893_v37 = vand.u32 2147483648, %v870_v18  ;;  %vm892_vm1 = vcmp.eq.f32.partialorder %v870_v18, 0.0 }
 0x9c7   :  { %v873_v20 = vmul.f32 %v1956_v16, %v872_v19 }
 0x9c9   :  { %v874_v21 = vmul.f32 0.5, %v873_v20  ;;  %v1775_v20 = vld [vmem:[%s2628_s6 + $0x20] sm:$0xff] }
 0x9cb   :  { %v875_v22 = vsub.f32 1.5, %v874_v21 }
 0x9cc   :  { %v1958_v23 = vpop.eup %1957 }
 0x9cd   :  { %v876_v24 = vmul.f32 %v1956_v16, %v875_v22  ;;  %v884_v25 = vmul.f32 %v1958_v23, %v870_v18 }
 0x9cf   :  { %v877_v26 = vmul.f32 %v876_v24, %v869_v14  ;;  %v885_v27 = vmul.f32 %v1958_v23, %v884_v25 }
 0x9d1   :  { %v879_v29 = vsel %vm878_vm13, %v869_v14, %v877_v26  ;;  %v886_v30 = vmul.f32 0.5, %v885_v27 }
 0x9d2   :  { %v882_v31 = vsel %vm880_vm14, %v881_v28, %v879_v29 }
 0x9d3   :  { %v895_v32 = vadd.f32 1e-06, %v882_v31  ;;  %v887_v33 = vsub.f32 1.5, %v886_v30 }
 0x9d5   :  { %1959 = vrcp.f32 %v895_v32  ;;  %v888_v34 = vmul.f32 %v1958_v23, %v887_v33 }
 0x9d7   :  { %v889_v36 = vmul.f32 %v888_v34, %v870_v18 }
 0x9d9   :  { %v891_v38 = vsel %vm890_vm15, %v870_v18, %v889_v36 }
 0x9da   :  { %v894_v42 = vsel %vm892_vm1, %v893_v37, %v891_v38 }
 0x9db   :  { %v1960_v6 = vpop.eup %1959  ;;  %v896_v43 = vadd.f32 1e-06, %v894_v42 }
 0x9dc   :  { %v904_v44 = vmul.f32 %v1960_v6, %v902_v39  ;;  %v2011_v39 = vld [vmem:[%s2623_s1] sm:$0xff] }
 0x9dd   :  { %1961 = vrcp.f32 %v896_v43 }
 0x9de   :  { %v909_v46 = vadd.f32 %v1896_v41, %v904_v44 }
 0x9e0   :  { %1767 = vmatmul.msk.f32.vlgmr.msra.gmra.mxu3 %vm60_vm0, %v909_v46  ;;  %v2012_v46 = vld [vmem:[%s2623_s1 + $0x8] sm:$0xff]  ;;  %s2648_s1 = smov 56  }
 0x9e3   :  { %v1962_v8 = vpop.eup %1961 }
 0x9e4   :  { %v905_v47 = vmul.f32 %v1962_v8, %v903_v2 }
 0x9e6   :  { %v910_v48 = vadd.f32 %v1896_v41, %v905_v47 }
 0x9e8   :  { %1768 = vmatmul.msk.f32.gmra.mxu3 %vm60_vm0, %v910_v48 }
 0xa63   :  { %v944_v50 = vpop.f32.mrf.mxu3 }
 0xa64   :  { %v945_v51 = vadd.f32 %v1897_v49, %v944_v50 }
 0xa66   :  { %952 = vrot.lane.b32.xlu0 %v945_v51, %s2040_s25 }
 0xa6b   :  { %v947_v0 = vpop.f32.mrf.mxu3 }
 0xa6c   :  { %v948_v52 = vadd.f32 %v1897_v49, %v947_v0 }
 0xa6e   :  { %954 = vrot.lane.b32.xlu2 %v948_v52, %s2040_s25  ;;  %v2439_v1 = vpack.i.bf16 %v945_v51, %v948_v52 }
 0xac8   :  { %v955_v54 = vpop.permute.xlu2 %954 }
 0xac9   :  { %1769 = vmatpush.xpose.msk.msra.mxu2 %vm171_vm6, %v955_v54 }
 0xad8   :  { %v953_v55 = vpop.permute.xlu0 %952 }
 0xad9   :  { %1770 = vmatpush.xpose.msk.msra.mxu2 %vm171_vm6, %v953_v55 }
 0xadc   :  { %1771 = vmatmul.msk.f32.vlgmr.msra.gmra.mxu2 %vm171_vm6, %v945_v51 }
 0xae4   :  { %1772 = vmatmul.msk.f32.gmra.mxu2 %vm171_vm6, %v948_v52 }
 0xb5f   :  { %v981_v56 = vpop.f32.mrf.mxu2 }
 0xb60   :  { %v987_v58 = vmul.f32 0.35355338, %v981_v56 }
 0xb62   :  { %v989_v59 = vadd.f32 %v987_v58, %v2201_v7 }
 0xb64   :  { %v991_v60 = vsel %vm207_vm7, %v989_v59, -inf }
 0xb65   :  { %992 = vmax.xlane.f32.xlu1 %v991_v60 }
 0xb67   :  { %v984_v40 = vpop.f32.mrf.mxu2 }
 0xb68   :  { %v988_v61 = vmul.f32 0.35355338, %v984_v40 }
 0xb6a   :  { %v990_v62 = vadd.f32 %v988_v61, %v2208_v13 }
 0xb6c   :  { %v994_v63 = vsel %vm207_vm7, %v990_v62, -inf }
 0xb6d   :  { %995 = vmax.xlane.f32.xlu1 %v994_v63 }
 0xb86   :  { %1868 = vrot.lane.b32.xlu1 %v2439_v1, %s2041_s30 }
 0xb8e   :  { %1056 = vrot.lane.b32.xlu1 %v948_v52, %s2042_s0 }
 0xb96   :  { %1054 = vrot.lane.b32.xlu1 %v945_v51, %s2042_s0 }
 0xb9e   :  { %1052 = vrot.lane.b32.xlu1 %v948_v52, %s2043_s17 }
 0xba6   :  { %1214 = vrot.lane.b32.xlu1 %v945_v51, %s2046_s22 }
 0xbae   :  { %1210 = vrot.lane.b32.xlu1 %v945_v51, %s2047_s23 }
 0xbb6   :  { %1347 = vrot.lane.b32.xlu1 %v945_v51, %s2044_s18 }
 0xbbe   :  { %1345 = vrot.lane.b32.xlu1 %v948_v52, %s2647_s3 }
 0xbd8   :  { %v993_v7 = vpop.xlane.xlu1 %992 }
 0xbd9   :  { %v997_v13 = vsub.f32 %v989_v59, %v993_v7 }
 0xbdb   :  { %v999_v45 = vmul.f32 1.442695, %v997_v13 }
 0xbdd   :  { %1963 = vpow2.f32 %v999_v45 }
 0xbe0   :  { %v996_v3 = vpop.xlane.xlu1 %995 }
 0xbe1   :  { %v998_v4 = vsub.f32 %v990_v62, %v996_v3 }
 0xbe3   :  { %v1964_v5 = vpop.eup %1963  ;;  %v1001_v9 = vmul.f32 1.442695, %v998_v4 }
 0xbe4   :  { %v1003_v17 = vsel %vm207_vm7, %v1964_v5, 0.0 }
 0xbe5   :  { %1965 = vpow2.f32 %v1001_v9  ;;  %1004 = vadd.xlane.f32.xlu0 %v1003_v17 }
 0xbeb   :  { %v1966_v11 = vpop.eup %1965 }
 0xbec   :  { %v1006_v12 = vsel %vm207_vm7, %v1966_v11, 0.0 }
 0xbed   :  { %1007 = vadd.xlane.f32.xlu2 %v1006_v12 }
 0xbf8   :  { %v1869_v14 = vpop.permute.xlu1 %1868 }
 0xbf9   :  { %v1870_v15 = vunpack.i.l.bf16 %v1869_v14  ;;  %1050 = vrot.lane.b32.xlu0 %v945_v51, %s2043_s17  ;;  %v1871_v16 = vunpack.i.h.bf16 %v1869_v14 }
 0xbfb   :  { %1039 = vmatpush.msra.mxu0 %v1870_v15 }
 0xbfd   :  { %1040 = vmatpush.msra.mxu0 %v1871_v16 }
 0xbff   :  { %1202 = vmatpush.msrb.mxu0 %v1775_v20 }
 0xc00   :  { %v1057_v18 = vpop.permute.xlu1 %1056 }
 0xc01   :  { %1349 = vrot.lane.b32.xlu0 %v948_v52, %s2044_s18  ;;  %1776 = vmatpush.xpose.msk.msrb.mxu1 %vm171_vm6, %v1057_v18 }
 0xc05   :  { %1216 = vrot.lane.b32.xlu2 %v948_v52, %s2046_s22  ;;  %s2649_s22 = smov 48  }
 0xc08   :  { %v1055_v19 = vpop.permute.xlu1 %1054 }
 0xc09   :  { %1343 = vrot.lane.b32.xlu0 %v945_v51, %s2647_s3  ;;  %1777 = vmatpush.xpose.msk.msrb.mxu1 %vm171_vm6, %v1055_v19 }
 0xc0d   :  { %1212 = vrot.lane.b32.xlu2 %v948_v52, %s2047_s23  ;;  %s2650_s23 = smov 40  }
 0xc10   :  { %v1053_v22 = vpop.permute.xlu1 %1052 }
 0xc18   :  { %v1215_v26 = vpop.permute.xlu1 %1214 }
 0xc20   :  { %v1211_v31 = vpop.permute.xlu1 %1210 }
 0xc28   :  { %v1348_v33 = vpop.permute.xlu1 %1347 }
 0xc30   :  { %v1346_v47 = vpop.permute.xlu1 %1345 }
 0xc58   :  { %v1005_v21 = vpop.xlane.xlu0 %1004 }
 0xc59   :  { %1967 = vrcp.f32 %v1005_v21 }
 0xc5f   :  { %v1968_v23 = vpop.eup %1967 }
 0xc60   :  { %v1011_v24 = vmul.f32 %v1968_v23, %v1964_v5  ;;  %v1008_v25 = vpop.xlane.xlu2 %1007 }
 0xc61   :  { %1969 = vrcp.f32 %v1008_v25 }
 0xc62   :  { %1773 = vmatmul.msk.f32.vlgmr.msra.gmra.mxu0 %vm207_vm7, %v1011_v24 }
 0xc67   :  { %v1970_v27 = vpop.eup %1969 }
 0xc68   :  { %v1217_v28 = vpop.permute.xlu2 %1216  ;;  %v1012_v29 = vmul.f32 %v1970_v27, %v1966_v11 }
 0xc69   :  { %1787 = vmatpush.xpose.msk.msra.mxu1 %vm171_vm6, %v1217_v28 }
 0xc6a   :  { %1774 = vmatmul.msk.f32.gmra.mxu0 %vm207_vm7, %v1012_v29 }
 0xc6b   :  { %v1051_v30 = vpop.permute.xlu0 %1050 }
 0xc6c   :  { %1778 = vmatmul.msk.f32.vlgmr.msrb.gmra.mxu1 %vm171_vm6, %v1051_v30 }
 0xc6d   :  { %1788 = vmatpush.xpose.msk.msra.mxu1 %vm171_vm6, %v1215_v26 }
 0xc70   :  { %v1213_v34 = vpop.permute.xlu2 %1212 }
 0xc73   :  { %v1350_v32 = vpop.permute.xlu0 %1349 }
 0xc74   :  { %1779 = vmatmul.msk.f32.gmra.mxu1 %vm171_vm6, %v1053_v22  ;;  %1796 = vmatpush.xpose.msk.msra.mxu0 %vm171_vm6, %v1350_v32 }
 0xc78   :  { %1797 = vmatpush.xpose.msk.msra.mxu0 %vm171_vm6, %v1348_v33 }
 0xc7b   :  { %v1344_v6 = vpop.permute.xlu0 %1343 }
 0xc7c   :  { %1789 = vmatmul.msk.f32.vlgmr.msra.gmra.mxu1 %vm171_vm6, %v1211_v31 }
 0xc84   :  { %1790 = vmatmul.msk.f32.gmra.mxu1 %vm171_vm6, %v1213_v34 }
 0xcdf   :  { %v1042_v35 = vpop.f32.mrf.mxu0 }
 0xce0   :  { %1785 = vmatmul.msk.f32.vlgmr.msrb.gmra.mxu0 %vm171_vm6, %v1042_v35 }
 0xce7   :  { %v1045_v36 = vpop.f32.mrf.mxu0 }
 0xce8   :  { %1786 = vmatmul.msk.f32.gmra.mxu0 %vm171_vm6, %v1045_v36 }
 0xce9   :  { %v1083_v37 = vpop.f32.mrf.mxu1 }
 0xcea   :  { %v1089_v38 = vmul.f32 0.35355338, %v1083_v37 }
 0xcec   :  { %v1091_v41 = vadd.f32 %v2011_v39, %v1089_v38 }
 0xcee   :  { %v1093_v42 = vsel %vm207_vm7, %v1091_v41, -inf }
 0xcef   :  { %1094 = vmax.xlane.f32.xlu2 %v1093_v42 }
 0xcf0   :  { %1798 = vmatmul.msk.f32.vlgmr.msra.gmra.mxu0 %vm171_vm6, %v1344_v6 }
 0xcf1   :  { %v1086_v43 = vpop.f32.mrf.mxu1 }
 0xcf2   :  { %v1090_v44 = vmul.f32 0.35355338, %v1086_v43 }
 0xcf4   :  { %v1092_v2 = vadd.f32 %v2012_v46, %v1090_v44 }
 0xcf6   :  { %v1096_v8 = vsel %vm207_vm7, %v1092_v2, -inf }
 0xcf7   :  { %1097 = vmax.xlane.f32.xlu0 %v1096_v8 }
 0xcf8   :  { %1799 = vmatmul.msk.f32.gmra.mxu0 %vm171_vm6, %v1346_v47 }
 0xcf9   :  { %v1243_v48 = vpop.f32.mrf.mxu1 }
 0xcfa   :  { %v1249_v49 = vmul.f32 0.35355338, %v1243_v48 }
 0xcfc   :  { %v1251_v50 = vadd.f32 %v2011_v39, %v1249_v49 }
 0xcfe   :  { %v1253_v51 = vsel %vm207_vm7, %v1251_v50, -inf }
 0xcff   :  { %1254 = vmax.xlane.f32.xlu1 %v1253_v51 }
 0xd01   :  { %v1246_v0 = vpop.f32.mrf.mxu1 }
 0xd02   :  { %v1250_v52 = vmul.f32 0.35355338, %v1246_v0 }
 0xd04   :  { %v1252_v54 = vadd.f32 %v2012_v46, %v1250_v52 }
 0xd06   :  { %v1256_v55 = vsel %vm207_vm7, %v1252_v54, -inf }
 0xd07   :  { %1257 = vmax.xlane.f32.xlu2 %v1256_v55 }
 0xd5d   :  { %v2486_v56 = vpop.f32.mrf.mxu0 }
 0xd62   :  { %v1095_v58 = vpop.xlane.xlu2 %1094 }
 0xd63   :  { %v1099_v59 = vsub.f32 %v1091_v41, %v1095_v58  ;;  %v1782_v58 = vld [vmem:[%s2628_s6 + $0x28] sm:$0xff] }
 0xd64   :  { %1173 = vmatpush.msrb.mxu2 %v1782_v58 }
 0xd65   :  { %v1101_v60 = vmul.f32 1.442695, %v1099_v59  ;;  %v2488_v40 = vpop.f32.mrf.mxu0 }
 0xd67   :  { %1971 = vpow2.f32 %v1101_v60 }
 0xd6a   :  { %v1098_v61 = vpop.xlane.xlu0 %1097 }
 0xd6b   :  { %v1100_v62 = vsub.f32 %v1092_v2, %v1098_v61 }
 0xd6d   :  { %v1972_v63 = vpop.eup %1971  ;;  %v1103_v7 = vmul.f32 1.442695, %v1100_v62  ;;  %v1376_v13 = vpop.f32.mrf.mxu0 }
 0xd6e   :  { %v1382_v45 = vmul.f32 0.35355338, %v1376_v13  ;;  %v1105_v3 = vsel %vm207_vm7, %v1972_v63, 0.0 }
 0xd6f   :  { %1973 = vpow2.f32 %v1103_v7  ;;  %1106 = vadd.xlane.f32.xlu1 %v1105_v3 }
 0xd70   :  { %v1384_v4 = vadd.f32 %v2011_v39, %v1382_v45 }
 0xd72   :  { %v1255_v5 = vpop.xlane.xlu1 %1254  ;;  %v1386_v9 = vsel %vm207_vm7, %v1384_v4, -inf }
 0xd73   :  { %v1259_v17 = vsub.f32 %v1251_v50, %v1255_v5  ;;  %1387 = vmax.xlane.f32.xlu0 %v1386_v9  ;;  %v1802_v9 = vld [vmem:[%s2628_s6 + $0x38] sm:$0xff] }
 0xd75   :  { %v1974_v11 = vpop.eup %1973  ;;  %v1261_v12 = vmul.f32 1.442695, %v1259_v17  ;;  %v1379_v14 = vpop.f32.mrf.mxu0 }
 0xd76   :  { %v1383_v15 = vmul.f32 0.35355338, %v1379_v14  ;;  %v1108_v16 = vsel %vm207_vm7, %v1974_v11, 0.0 }
 0xd77   :  { %1975 = vpow2.f32 %v1261_v12  ;;  %1109 = vadd.xlane.f32.xlu2 %v1108_v16 }
 0xd78   :  { %v1385_v19 = vadd.f32 %v2012_v46, %v1383_v15 }
 0xd7a   :  { %v1258_v18 = vpop.xlane.xlu2 %1257  ;;  %v1389_v24 = vsel %vm207_vm7, %v1385_v19, -inf }
 0xd7b   :  { %v1260_v20 = vsub.f32 %v1252_v54, %v1258_v18 }
 0xd7d   :  { %v1976_v21 = vpop.eup %1975  ;;  %v1263_v22 = vmul.f32 1.442695, %v1260_v20 }
 0xd7e   :  { %v1265_v23 = vsel %vm207_vm7, %v1976_v21, 0.0 }
 0xd7f   :  { %1977 = vpow2.f32 %v1263_v22  ;;  %1266 = vadd.xlane.f32.xlu1 %v1265_v23  ;;  %1390 = vmax.xlane.f32.xlu2 %v1389_v24 }
 0xd85   :  { %v1978_v25 = vpop.eup %1977 }
 0xd86   :  { %v1268_v26 = vsel %vm207_vm7, %v1978_v25, 0.0 }
 0xd87   :  { %1269 = vadd.xlane.f32.xlu1 %v1268_v26  ;;  %1873 = vrot.lane.b32.xlu0 %v2439_v1, %s2648_s1  ;;  %s2052_s1 = smov 128  }
 0xd97   :  { %1878 = vrot.lane.b32.xlu2 %v2439_v1, %s2649_s22 }
 0xda0   :  { %1883 = vrot.lane.b32.xlu1 %v2439_v1, %s2650_s23 }
 0xde2   :  { %v1107_v32 = vpop.xlane.xlu1 %1106 }
 0xde6   :  { %v1388_v27 = vpop.xlane.xlu0 %1387 }
 0xde7   :  { %v1392_v28 = vsub.f32 %v1384_v4, %v1388_v27 }
 0xde9   :  { %v1394_v29 = vmul.f32 1.442695, %v1392_v28 }
 0xdea   :  { %v1110_v30 = vpop.xlane.xlu2 %1109 }
 0xdeb   :  { %1979 = vpow2.f32 %v1394_v29 }
 0xdec   :  { %1981 = vrcp.f32 %v1107_v32 }
 0xdf1   :  { %v1980_v31 = vpop.eup %1979 }
 0xdf2   :  { %v1391_v33 = vpop.xlane.xlu2 %1390  ;;  %v1398_v34 = vsel %vm207_vm7, %v1980_v31, 0.0  ;;  %v1982_v38 = vpop.eup %1981 }
 0xdf3   :  { %v1393_v35 = vsub.f32 %v1385_v19, %v1391_v33  ;;  %1399 = vadd.xlane.f32.xlu0 %v1398_v34  ;;  %v1113_v6 = vmul.f32 %v1982_v38, %v1972_v63  ;;  %v1267_v46 = vpop.xlane.xlu1 %1266  ;;  %v1793_v63 = vld [vmem:[%s2628_s6 + $0x30] sm:$0xff] }
 0xdf4   :  { %1333 = vmatpush.msra.mxu2 %v1793_v63  ;;  %v1818_v63 = vld [vmem:[%s2634_s12 + $0x58] sm:$0xff] }
 0xdf5   :  { %v1396_v36 = vmul.f32 1.442695, %v1393_v35 }
 0xdf7   :  { %1983 = vpow2.f32 %v1396_v36 }
 0xdf8   :  { %1985 = vrcp.f32 %v1110_v30 }
 0xdf9   :  { %v1874_v37 = vpop.permute.xlu0 %1873  ;;  %1987 = vrcp.f32 %v1267_v46 }
 0xdfa   :  { %v1875_v39 = vunpack.i.l.bf16 %v1874_v37  ;;  %v1879_v41 = vpop.permute.xlu2 %1878  ;;  %v1876_v1 = vunpack.i.h.bf16 %v1874_v37 }
 0xdfb   :  { %v1880_v43 = vunpack.i.l.bf16 %v1879_v41  ;;  %v1881_v2 = vunpack.i.h.bf16 %v1879_v41  ;;  %v1270_v48 = vpop.xlane.xlu1 %1269  ;;  %v1810_v41 = vld [vmem:[%s2632_s10 + $0x30] sm:$0xff] }
 0xdfc   :  { %1141 = vmatpush.msrb.mxu3 %v1875_v39  ;;  %1989 = vrcp.f32 %v1270_v48  ;;  %v1811_v39 = vld [vmem:[%s2632_s10 + $0x38] sm:$0xff] }
 0xdfd   :  { %v1984_v42 = vpop.eup %1983 }
 0xdfe   :  { %1142 = vmatpush.msrb.mxu3 %v1876_v1  ;;  %v1401_v44 = vsel %vm207_vm7, %v1984_v42, 0.0  ;;  %v1986_v8 = vpop.eup %1985  ;;  %v1809_v1 = vld [vmem:[%s2632_s10 + $0x28] sm:$0xff] }
 0xdff   :  { %1780 = vmatmul.msk.f32.vlgmr.msrb.gmra.mxu3 %vm207_vm7, %v1113_v6  ;;  %1402 = vadd.xlane.f32.xlu2 %v1401_v44  ;;  %v1114_v47 = vmul.f32 %v1986_v8, %v1974_v11  ;;  %v1988_v49 = vpop.eup %1987 }
 0xe00   :  { %1301 = vmatpush.msra.mxu3 %v1880_v43  ;;  %v1273_v50 = vmul.f32 %v1988_v49, %v1976_v21  ;;  %v1898_v21 = vld [vmem:[%s2629_s7 + $0x1] ss:$0 sm:$0xff] }
 0xe02   :  { %1302 = vmatpush.msra.mxu3 %v1881_v2  ;;  %v1990_v51 = vpop.eup %1989 }
 0xe03   :  { %v1274_v55 = vmul.f32 %v1990_v51, %v1978_v25  ;;  %v1821_v51 = vld [vmem:[%s2634_s12 + $0x70] sm:$0xff] }
 0xe04   :  { %1466 = vmatpush.msrb.mxu3 %v1802_v9 }
 0xe07   :  { %1781 = vmatmul.msk.f32.gmra.mxu3 %vm207_vm7, %v1114_v47 }
 0xe0f   :  { %1791 = vmatmul.msk.f32.vlgmr.msra.gmra.mxu3 %vm207_vm7, %v1273_v50  ;;  %v1822_v50 = vld [vmem:[%s2634_s12 + $0x78] sm:$0xff] }
 0xe10   :  { %1613 = vmatpush.msrb.mxu0 %v1822_v50 }
 0xe12   :  { %v1884_v0 = vpop.permute.xlu1 %1883  ;;  %1614 = vmatpush.msrb.mxu0 %v1821_v51 }
 0xe13   :  { %v1885_v52 = vunpack.i.l.bf16 %v1884_v0  ;;  %v1886_v54 = vunpack.i.h.bf16 %v1884_v0 }
 0xe15   :  { %1434 = vmatpush.msrb.mxu1 %v1885_v52  ;;  %v1820_v52 = vld [vmem:[%s2634_s12 + $0x68] sm:$0xff] }
 0xe16   :  { %1615 = vmatpush.msrb.mxu0 %v1820_v52 }
 0xe17   :  { %1792 = vmatmul.msk.f32.gmra.mxu3 %vm207_vm7, %v1274_v55  ;;  %1435 = vmatpush.msrb.mxu1 %v1886_v54 }
 0xe66   :  { %v1400_v59 = vpop.xlane.xlu0 %1399 }
 0xe67   :  { %1991 = vrcp.f32 %v1400_v59  ;;  %v1819_v59 = vld [vmem:[%s2634_s12 + $0x60] sm:$0xff] }
 0xe68   :  { %1616 = vmatpush.msrb.mxu0 %v1819_v59 }
 0xe6a   :  { %1617 = vmatpush.msrb.mxu0 %v1818_v63 }
 0xe6d   :  { %v1992_v60 = vpop.eup %1991 }
 0xe6e   :  { %v1406_v61 = vmul.f32 %v1992_v60, %v1980_v31 }
 0xe70   :  { %1800 = vmatmul.msk.f32.vlgmr.msrb.gmra.mxu1 %vm207_vm7, %v1406_v61 }
 0xe72   :  { %v1403_v62 = vpop.xlane.xlu2 %1402 }
 0xe73   :  { %1993 = vrcp.f32 %v1403_v62 }
 0xe79   :  { %v1994_v7 = vpop.eup %1993 }
 0xe7a   :  { %v1407_v13 = vmul.f32 %v1994_v7, %v1984_v42  ;;  %v1808_v42 = vld [vmem:[%s2632_s10 + $0x20] sm:$0xff]  ;;  %s2053_s10 = smov 8  }
 0xe7c   :  { %1801 = vmatmul.msk.f32.gmra.mxu1 %vm207_vm7, %v1407_v13 }
 0xe82   :  { %v1144_v45 = vpop.f32.mrf.mxu3 }
 0xe83   :  { %1783 = vmatmul.msk.f32.vlgmr.msrb.gmra.mxu2 %vm171_vm6, %v1144_v45 }
 0xe84   :  { %1577 = vmatpush.msrb.mxu2 %v1811_v39 }
 0xe86   :  { %1578 = vmatpush.msrb.mxu2 %v1810_v41 }
 0xe88   :  { %1579 = vmatpush.msrb.mxu2 %v1809_v1 }
 0xe8a   :  { %v1147_v3 = vpop.f32.mrf.mxu3  ;;  %1580 = vmatpush.msrb.mxu2 %v1808_v42 }
 0xe8b   :  { %1784 = vmatmul.msk.f32.gmra.mxu2 %vm171_vm6, %v1147_v3  ;;  %v1899_v3 = vld [vmem:[%s2630_s8 + $0x1] ss:$0 sm:$0xff] }
 0xe92   :  { %v1304_v4 = vpop.f32.mrf.mxu3 }
 0xe93   :  { %1794 = vmatmul.msk.f32.vlgmr.msra.gmra.mxu2 %vm171_vm6, %v1304_v4 }
 0xe9a   :  { %v1307_v5 = vpop.f32.mrf.mxu3 }
 0xe9b   :  { %1795 = vmatmul.msk.f32.gmra.mxu2 %vm171_vm6, %v1307_v5 }
 0xeed   :  { %v1437_v17 = vpop.f32.mrf.mxu1 }
 0xeee   :  { %1803 = vmatmul.msk.f32.vlgmr.msrb.gmra.mxu3 %vm171_vm6, %v1437_v17  ;;  %v1900_v17 = vld [vmem:[%s2631_s9 + $0x1] ss:$0 sm:$0xff] }
 0xef9   :  { %v1440_v11 = vpop.f32.mrf.mxu1 }
 0xefa   :  { %1804 = vmatmul.msk.f32.gmra.mxu3 %vm171_vm6, %v1440_v11 }
 0xf06   :  { %v1175_v12 = vpop.f32.mrf.mxu2 }
 0xf07   :  { %v1205_v16 = vadd.f32 %v2486_v56, %v1175_v12 }
 0xf0e   :  { %v1178_v14 = vpop.f32.mrf.mxu2 }
 0xf0f   :  { %v1208_v26 = vadd.f32 %v2488_v40, %v1178_v14 }
 0xf16   :  { %v1335_v15 = vpop.f32.mrf.mxu2 }
 0xf17   :  { %v1341_v18 = vadd.f32 %v1335_v15, %v1205_v16 }
 0xf1e   :  { %v1338_v25 = vpop.f32.mrf.mxu2 }
 0xf1f   :  { %v1342_v27 = vadd.f32 %v1338_v25, %v1208_v26  ;;  %v1817_v26 = vld [vmem:[%s2634_s12 + $0x50] sm:$0xff] }
 0xf20   :  { %1618 = vmatpush.msrb.mxu0 %v1817_v26 }
 0xf71   :  { %v1468_v19 = vpop.f32.mrf.mxu3 }
 0xf72   :  { %v1474_v20 = vadd.f32 %v1468_v19, %v1341_v18 }
 0xf74   :  { %v1476_v22 = vadd.f32 %v1474_v20, %v2391_v53 }
 0xf76   :  { %v2530_v23 = vadd.f32 %v1898_v21, %v1476_v22 }
 0xf78   :  { %v1489_v24 = vsel %vm60_vm0, %v2530_v23, 0.0 }
 0xf79   :  { %1490 = vadd.xlane.f32.xlu1 %v1489_v24 }
 0xf7d   :  { %v1471_v56 = vpop.f32.mrf.mxu3 }
 0xf7e   :  { %v1475_v28 = vadd.f32 %v1471_v56, %v1342_v27  ;;  %v1816_v27 = vld [vmem:[%s2634_s12 + $0x48] sm:$0xff]  ;;  %v1815_v56 = vld [vmem:[%s2634_s12 + $0x40] sm:$0xff] }
 0xf7f   :  { %1619 = vmatpush.msrb.mxu0 %v1816_v27 }
 0xf80   :  { %v1477_v29 = vadd.f32 %v1475_v28, %v2396_v57  ;;  %v1901_v28 = vld [vmem:[%s2633_s11 + $0x1] ss:$0 sm:$0xff] }
 0xf81   :  { %1620 = vmatpush.msrb.mxu0 %v1815_v56 }
 0xf82   :  { %v2536_v30 = vadd.f32 %v1898_v21, %v1477_v29 }
 0xf84   :  { %v1492_v31 = vsel %vm60_vm0, %v2536_v30, 0.0 }
 0xf85   :  { %1493 = vadd.xlane.f32.xlu0 %v1492_v31 }
 0xfec   :  { %v1491_v53 = vpop.xlane.xlu1 %1490 }
 0xfed   :  { %v1495_v32 = vmul.f32 %v1491_v53, %v2153_v10 }
 0xfef   :  { %v1497_v33 = vsub.f32 %v2530_v23, %v1495_v32 }
 0xff1   :  { %v1499_v34 = vmul.f32 %v1497_v33, %v1497_v33  ;;  %v1540_v9 = vmul.f32 %v1899_v3, %v1497_v33 }
 0xff3   :  { %v1501_v35 = vsel %vm60_vm0, %v1499_v34, 0.0 }
 0xff4   :  { %1502 = vadd.xlane.f32.xlu0 %v1501_v35  ;;  %v1902_v35 = vld [vmem:[%s2635_s13 + $0x1] ss:$0 sm:$0xff] }
 0xff8   :  { %v1494_v40 = vpop.xlane.xlu0 %1493 }
 0xff9   :  { %v1496_v36 = vmul.f32 %v1494_v40, %v2153_v10 }
 0xffb   :  { %v2545_v57 = vsub.f32 %v2536_v30, %v1496_v36 }
 0xffd   :  { %v1500_v37 = vmul.f32 %v2545_v57, %v2545_v57  ;;  %v1541_v21 = vmul.f32 %v1899_v3, %v2545_v57 }
 0xfff   :  { %v1504_v38 = vsel %vm60_vm0, %v1500_v37, 0.0 }
0x1000   :  { %1505 = vadd.xlane.f32.xlu0 %v1504_v38 }
0x1067   :  { %v1503_v6 = vpop.xlane.xlu0 %1502 }
0x1068   :  { %v1507_v43 = vmul.f32 0.032258064, %v1503_v6 }
0x106a   :  { %1995 = vrsqrt.f32 %v1507_v43  ;;  %vm1516_vm2 = vcmp.eq.f32.partialorder %v1507_v43, inf  ;;  %v1519_v58 = vand.u32 2147483648, %v1507_v43  ;;  %vm1518_vm3 = vcmp.eq.f32.partialorder %v1507_v43, 0.0 }
0x1070   :  { %v1996_v44 = vpop.eup %1995 }
0x1071   :  { %v1510_v46 = vmul.f32 %v1996_v44, %v1507_v43 }
0x1073   :  { %v1511_v2 = vmul.f32 %v1996_v44, %v1510_v46  ;;  %v1506_v8 = vpop.xlane.xlu0 %1505 }
0x1074   :  { %v1508_v47 = vmul.f32 0.032258064, %v1506_v8 }
0x1075   :  { %v1512_v48 = vmul.f32 0.5, %v1511_v2 }
0x1076   :  { %1997 = vrsqrt.f32 %v1508_v47  ;;  %vm1528_vm4 = vcmp.eq.f32.partialorder %v1508_v47, inf  ;;  %v1531_v15 = vand.u32 2147483648, %v1508_v47  ;;  %vm1530_vm5 = vcmp.eq.f32.partialorder %v1508_v47, 0.0 }
0x1077   :  { %v1513_v49 = vsub.f32 1.5, %v1512_v48 }
0x1079   :  { %v1514_v0 = vmul.f32 %v1996_v44, %v1513_v49 }
0x107b   :  { %v1515_v54 = vmul.f32 %v1514_v0, %v1507_v43 }
0x107c   :  { %v1998_v55 = vpop.eup %1997 }
0x107d   :  { %v1522_v60 = vmul.f32 %v1998_v55, %v1508_v47  ;;  %v1517_v61 = vsel %vm1516_vm2, %v1507_v43, %v1515_v54 }
0x107e   :  { %v1520_v62 = vsel %vm1518_vm3, %v1519_v58, %v1517_v61 }
0x107f   :  { %v1533_v7 = vadd.f32 1e-06, %v1520_v62  ;;  %v1523_v13 = vmul.f32 %v1998_v55, %v1522_v60 }
0x1081   :  { %1999 = vrcp.f32 %v1533_v7  ;;  %v1524_v45 = vmul.f32 0.5, %v1523_v13 }
0x1083   :  { %v1525_v4 = vsub.f32 1.5, %v1524_v45 }
0x1085   :  { %v1526_v5 = vmul.f32 %v1998_v55, %v1525_v4  ;;  %v1903_v4 = vld [vmem:[%s2636_s14] ss:$0 sm:$0xff]  ;;  %s2051_s14 = smov [#allocation2]  }
0x1086   :  { %s1705_s0 = sshll.u32 %s2051_s14, 4  ;;  %s1706_s0 = int_to_ptr.vmem [resolvable:$true] %s1705_s0 }
0x1087   :  { %v2000_v11 = vpop.eup %1999  ;;  %v1527_v12 = vmul.f32 %v1526_v5, %v1508_v47 }
0x1088   :  { %v1542_v14 = vmul.f32 %v2000_v11, %v1540_v9  ;;  %v1904_v11 = vld [vmem:[%s2637_s15] ss:$0 sm:$0xff]  ;;  %s1707_s15 = sshll.u32 %s2638_s16, 4  ;;  %s1708_s15 = int_to_ptr.hbm [resolvable:$true] %s1707_s15 }
0x1089   :  { %v1529_v16 = vsel %vm1528_vm4, %v1508_v47, %v1527_v12 }
0x108a   :  { %v1547_v18 = vadd.f32 %v1900_v17, %v1542_v14  ;;  %v1532_v19 = vsel %vm1530_vm5, %v1531_v15, %v1529_v16 }
0x108b   :  { %v1534_v20 = vadd.f32 1e-06, %v1532_v19 }
0x108c   :  { %1813 = vmatmul.msk.f32.vlgmr.msrb.gmra.mxu2 %vm60_vm0, %v1547_v18 }
0x108d   :  { %2001 = vrcp.f32 %v1534_v20 }
0x1093   :  { %v2002_v22 = vpop.eup %2001 }
0x1094   :  { %v1543_v24 = vmul.f32 %v2002_v22, %v1541_v21 }
0x1096   :  { %v1548_v25 = vadd.f32 %v1900_v17, %v1543_v24 }
0x1098   :  { %1814 = vmatmul.msk.f32.gmra.mxu2 %vm60_vm0, %v1548_v25 }
0x110f   :  { %v1582_v29 = vpop.f32.mrf.mxu2 }
0x1110   :  { %v1583_v31 = vadd.f32 %v1901_v28, %v1582_v29 }
0x1112   :  { %v1588_v53 = vmax.f32 %v1583_v31, 0.0 }
0x1114   :  { %1823 = vmatmul.msk.f32.vlgmr.msrb.gmra.mxu0 %vm809_vm12, %v1588_v53 }
0x111b   :  { %v1585_v32 = vpop.f32.mrf.mxu2 }
0x111c   :  { %v1586_v33 = vadd.f32 %v1901_v28, %v1585_v32 }
0x111e   :  { %v1589_v34 = vmax.f32 %v1586_v33, 0.0 }
0x1120   :  { %1824 = vmatmul.msk.f32.gmra.mxu0 %vm809_vm12, %v1589_v34 }
0x1191   :  { %v1622_v40 = vpop.f32.mrf.mxu0 }
0x1192   :  { %v1628_v36 = vadd.f32 %v1622_v40, %v2530_v23 }
0x1194   :  { %v1635_v57 = vadd.f32 %v1902_v35, %v1628_v36 }
0x1196   :  { %v1639_v37 = vsel %vm60_vm0, %v1635_v57, 0.0 }
0x1197   :  { %1640 = vadd.xlane.f32.xlu2 %v1639_v37 }
0x119d   :  { %v1625_v38 = vpop.f32.mrf.mxu0 }
0x119e   :  { %v1629_v39 = vadd.f32 %v1625_v38, %v2536_v30 }
0x11a0   :  { %v1636_v41 = vadd.f32 %v1902_v35, %v1629_v39 }
0x11a2   :  { %v1642_v1 = vsel %vm60_vm0, %v1636_v41, 0.0 }
0x11a3   :  { %1643 = vadd.xlane.f32.xlu0 %v1642_v1 }
0x120a   :  { %v1641_v42 = vpop.xlane.xlu2 %1640 }
0x120b   :  { %v1645_v6 = vmul.f32 %v1641_v42, %v2153_v10 }
0x120d   :  { %v1647_v43 = vsub.f32 %v1635_v57, %v1645_v6 }
0x120f   :  { %v1649_v44 = vmul.f32 %v1647_v43, %v1647_v43  ;;  %v1690_v17 = vmul.f32 %v1903_v4, %v1647_v43 }
0x1211   :  { %v1651_v46 = vsel %vm60_vm0, %v1649_v44, 0.0 }
0x1212   :  { %1652 = vadd.xlane.f32.xlu2 %v1651_v46 }
0x1216   :  { %v1644_v23 = vpop.xlane.xlu0 %1643 }
0x1217   :  { %v1646_v2 = vmul.f32 %v1644_v23, %v2153_v10 }
0x1219   :  { %v1648_v8 = vsub.f32 %v1636_v41, %v1646_v2 }
0x121b   :  { %v1650_v47 = vmul.f32 %v1648_v8, %v1648_v8  ;;  %v1691_v22 = vmul.f32 %v1903_v4, %v1648_v8 }
0x121d   :  { %v1654_v48 = vsel %vm60_vm0, %v1650_v47, 0.0 }
0x121e   :  { %1655 = vadd.xlane.f32.xlu1 %v1654_v48 }
0x1285   :  { %v1653_v30 = vpop.xlane.xlu2 %1652 }
0x1286   :  { %v1657_v49 = vmul.f32 0.032258064, %v1653_v30 }
0x1288   :  { %2003 = vrsqrt.f32 %v1657_v49  ;;  %vm1666_vm6 = vcmp.eq.f32.partialorder %v1657_v49, inf  ;;  %v1669_v10 = vand.u32 2147483648, %v1657_v49  ;;  %vm1668_vm7 = vcmp.eq.f32.partialorder %v1657_v49, 0.0 }
0x128e   :  { %v2004_v50 = vpop.eup %2003 }
0x128f   :  { %v1660_v51 = vmul.f32 %v2004_v50, %v1657_v49 }
0x1291   :  { %v1661_v0 = vmul.f32 %v2004_v50, %v1660_v51  ;;  %v1656_v52 = vpop.xlane.xlu1 %1655 }
0x1292   :  { %v1658_v54 = vmul.f32 0.032258064, %v1656_v52 }
0x1293   :  { %v1662_v55 = vmul.f32 0.5, %v1661_v0 }
0x1294   :  { %2005 = vrsqrt.f32 %v1658_v54  ;;  %vm1678_vm8 = vcmp.eq.f32.partialorder %v1658_v54, inf  ;;  %v1681_v15 = vand.u32 2147483648, %v1658_v54  ;;  %vm1680_vm9 = vcmp.eq.f32.partialorder %v1658_v54, 0.0 }
0x1295   :  { %v1663_v58 = vsub.f32 1.5, %v1662_v55 }
0x1297   :  { %v1664_v59 = vmul.f32 %v2004_v50, %v1663_v58 }
0x1299   :  { %v1665_v60 = vmul.f32 %v1664_v59, %v1657_v49 }
0x129a   :  { %v2006_v61 = vpop.eup %2005 }
0x129b   :  { %v1667_v62 = vsel %vm1666_vm6, %v1657_v49, %v1665_v60  ;;  %v1672_v63 = vmul.f32 %v2006_v61, %v1658_v54 }
0x129c   :  { %v1670_v7 = vsel %vm1668_vm7, %v1669_v10, %v1667_v62 }
0x129d   :  { %v1673_v13 = vmul.f32 %v2006_v61, %v1672_v63  ;;  %v1683_v45 = vadd.f32 1e-06, %v1670_v7 }
0x129f   :  { %v1674_v3 = vmul.f32 0.5, %v1673_v13  ;;  %2007 = vrcp.f32 %v1683_v45 }
0x12a1   :  { %v1675_v5 = vsub.f32 1.5, %v1674_v3 }
0x12a3   :  { %v1676_v9 = vmul.f32 %v2006_v61, %v1675_v5 }
0x12a5   :  { %v2008_v12 = vpop.eup %2007  ;;  %v1677_v14 = vmul.f32 %v1676_v9, %v1658_v54 }
0x12a6   :  { %v1692_v16 = vmul.f32 %v2008_v12, %v1690_v17 }
0x12a7   :  { %v1679_v18 = vsel %vm1678_vm8, %v1658_v54, %v1677_v14 }
0x12a8   :  { %v1682_v19 = vsel %vm1680_vm9, %v1681_v15, %v1679_v18  ;;  %v1697_v20 = vadd.f32 %v1904_v11, %v1692_v16 }
0x12a9   :  { %v1684_v21 = vadd.f32 1e-06, %v1682_v19 }
0x12aa   :  { %1699 = vst.msk [vmem:[#allocation2] sm:$0xff] %vm60_vm0, %v1697_v20 }
0x12ab   :  { %2009 = vrcp.f32 %v1684_v21 }
0x12b1   :  { %v2010_v24 = vpop.eup %2009 }
0x12b2   :  { %v1693_v25 = vmul.f32 %v2010_v24, %v1691_v22 }
0x12b4   :  { %v1698_v26 = vadd.f32 %v1904_v11, %v1693_v25 }
0x12b6   :  { %1700 = vst.msk [vmem:[#allocation2 + $0x8] sm:$0xff] %vm60_vm0, %v1698_v26 }
0x12b7   :  { %1713 = dma.vmem_to_hbm [thread:$0]  %s1706_s0, 256, %s1708_s15, [#allocation3], %s2052_s1, %s2052_s1, %s2053_s10  }
0x12b8   :  { %2037 = dma.done.wait [#allocation3], 256  }
0x12b9   :  { %2038 = vsyncadd [#allocation3], 4294967040 }
0x12ba   :  { %1718 = vsyncpa [#allocation3], 1 }

</bundles_post_ra>
